<compile_context>
chip_gen: v5e
topology: v5e:2x2
jax: 0.10.0
libtpu: 0.0.40
codegen_flags: <defaults>
</compile_context>

<pallas_src>
import functools

import jax
import jax.numpy as jnp
from jax.experimental import pallas as pl
from jax.experimental.pallas import tpu as pltpu


# -----------------------------------------------------------------------------
# Kernel
# -----------------------------------------------------------------------------
def _combined_kernel(x_ref, w1_ref, b1_ref, w2_ref, b2_ref, w3_ref, b3_ref,
                     o_ref, *, divergence):
    """Shared MLP + final activation on one fused (x1|x2) batch tile.

    Layout: features on sublanes, batch on lanes.
      x_ref : (D, tile_b)      w1: (H, D)   w2: (H, H)   w3: (H, 1)
      b1/b2 : (H, 1)           b3: (1,) scalar in SMEM
      o_ref : (1, tile_b)      -> single unmasked lane-dense store
    """
    hi = jax.lax.Precision.HIGHEST

    x = x_ref[...]                                                   # (D, tb)

    # Layer 1 + ReLU: (H, D) @ (D, tb) -> (H, tb)
    h = jnp.dot(w1_ref[...], x,
                preferred_element_type=jnp.float32, precision=hi)
    h = jnp.maximum(h + b1_ref[...], 0.0)

    # Layer 2 + ReLU: (H, H) @ (H, tb) -> (H, tb)
    h = jnp.dot(w2_ref[...], h,
                preferred_element_type=jnp.float32, precision=hi)
    h = jnp.maximum(h + b2_ref[...], 0.0)

    # Layer 3 (H -> 1): VPU multiply + XLU sublane reduce (not an N=1 MXU push).
    z = jnp.sum(h * w3_ref[...], axis=0, keepdims=True) + b3_ref[0]  # (1, tb)

    if divergence == 'GAN':
        # nn.Sigmoid
        y = 1.0 / (1.0 + jnp.exp(-z))
    else:
        # nn.Softplus (default beta=1, threshold=20)
        y = jnp.where(z > 20.0, z, jnp.log1p(jnp.exp(jnp.minimum(z, 20.0))))

    o_ref[...] = y.astype(o_ref.dtype)


# -----------------------------------------------------------------------------
# Wrapper
# -----------------------------------------------------------------------------
_LANE = 128
_MAX_TILE = 4096  # lanes per step; VMEM use at 4096 is only a few MB on any gen


def _round_up(x, m):
    return ((x + m - 1) // m) * m


def _tensorcores_per_chip():
    """2 on v7x (dual-TC), 1 otherwise. Best-effort; default 1."""
    try:
        kind = jax.devices()[0].device_kind.lower()
    except Exception:
        return 1
    return 2 if "v7" in kind else 1


def combined_net_forward(x1, x2, params, *, divergence='KL', tile_b=None):
    """Pallas implementation of CombinedNet.forward(x1, x2).

    `params` use PyTorch nn.Linear layouts:
      w1 (H, D), b1 (H,), w2 (H, H), b2 (H,), w3 (1, H), b3 (1,)
    Returns (out1, out2), each of shape (B, 1), matching the PyTorch module.
    """
    w1, b1, w2, b2, w3, b3 = params
    B, D = x1.shape
    H = w1.shape[0]
    assert x2.shape == (B, D)
    assert w1.shape == (H, D) and w2.shape == (H, H) and w3.shape == (1, H)

    # ---- tiling: fuse the two streams into one batch, minimal grid steps ----
    BT = 2 * B                                  # fused batch (x1 rows ++ x2 rows)
    BT_lane = _round_up(BT, _LANE)
    if tile_b is None:
        if BT_lane <= _MAX_TILE:
            n_steps = 1
            tile_b = BT_lane
        else:
            n_steps = pl.cdiv(BT_lane, _MAX_TILE)
            # v7x only: even step count so both TensorCores get equal work.
            if _tensorcores_per_chip() == 2 and n_steps % 2 == 1:
                n_steps += 1
            tile_b = _round_up(pl.cdiv(BT_lane, n_steps), _LANE)
    else:
        assert tile_b % _LANE == 0
        n_steps = pl.cdiv(BT_lane, tile_b)
    BT_pad = n_steps * tile_b
    grid = (n_steps,)

    # ---- wrapper-side layout: one fused (D, BT_pad) lane-dense input --------
    # concat + pad + transpose fuse into a single XLA copy pass; no per-stream
    # prep and no in-kernel concatenate.
    x_cat = jnp.concatenate([x1, x2], axis=0).astype(jnp.float32)    # (2B, D)
    if BT_pad != BT:
        x_cat = jnp.pad(x_cat, ((0, BT_pad - BT), (0, 0)))
    x_fused = x_cat.T                                                # (D, BT_pad)
    # Note: D=4 underfills the 8 f32 sublanes of each vreg -- harmless at this
    # size; do not repack x into the sublane axis (block-diag weights would
    # double layer-2 MXU work).

    w1c = w1.astype(jnp.float32)
    w2c = w2.astype(jnp.float32)
    b1c = b1.reshape(H, 1).astype(jnp.float32)
    b2c = b2.reshape(H, 1).astype(jnp.float32)
    w3c = w3.reshape(H, 1).astype(jnp.float32)
    b3s = b3.reshape(1).astype(jnp.float32)          # true scalar -> SMEM

    kernel = functools.partial(_combined_kernel, divergence=divergence)

    x_spec = pl.BlockSpec((D, tile_b), lambda i: (0, i))
    o_spec = pl.BlockSpec((1, tile_b), lambda i: (0, i))
    rep = lambda shape: pl.BlockSpec(shape, lambda i: (0,) * len(shape))

    out = pl.pallas_call(
        kernel,
        out_shape=jax.ShapeDtypeStruct((1, BT_pad), jnp.float32),
        grid_spec=pltpu.PrefetchScalarGridSpec(
            num_scalar_prefetch=0,
            grid=grid,
            in_specs=[x_spec,
                      rep((H, D)), rep((H, 1)),
                      rep((H, H)), rep((H, 1)),
                      rep((H, 1)),
                      pl.BlockSpec(memory_space=pltpu.MemorySpace.SMEM)],
            out_specs=o_spec,
        ),
        compiler_params=pltpu.CompilerParams(
            dimension_semantics=("parallel",)),
    )(x_fused, w1c, b1c, w2c, b2c, w3c, b3s)

    out1 = out[0, :B].reshape(B, 1)
    out2 = out[0, B:2 * B].reshape(B, 1)
    return out1, out2


# -----------------------------------------------------------------------------
# Reference + init
# -----------------------------------------------------------------------------
def _reference_forward(x1, x2, params, divergence):
    """Plain-JAX reference mirroring the PyTorch forward exactly (full f32)."""
    w1, b1, w2, b2, w3, b3 = params
    hi = jax.lax.Precision.HIGHEST

    def mlp(x):
        h = jnp.maximum(jnp.dot(x, w1.T, precision=hi) + b1, 0.0)
        h = jnp.maximum(jnp.dot(h, w2.T, precision=hi) + b2, 0.0)
        return jnp.dot(h, w3.T, precision=hi) + b3

    act = jax.nn.sigmoid if divergence == 'GAN' else jax.nn.softplus
    return act(mlp(x1)), act(mlp(x2))


def init_params(key, D, H):
    """Deterministic synthetic init (PyTorch-Linear-like uniform fan-in scaling),
    stored in PyTorch nn.Linear layouts: weight (out, in), bias (out,)."""
    ks = jax.random.split(key, 6)

    def u(k, shape, fan_in):
        bound = 1.0 / jnp.sqrt(fan_in)
        return jax.random.uniform(k, shape, jnp.float32, -bound, bound)

    w1 = u(ks[0], (H, D), D)
    b1 = u(ks[1], (H,), D)
    w2 = u(ks[2], (H, H), H)
    b2 = u(ks[3], (H,), H)
    w3 = u(ks[4], (1, H), H)
    b3 = u(ks[5], (1,), H)
    return (w1, b1, w2, b2, w3, b3)


# -----------------------------------------------------------------------------
# Self-test
# -----------------------------------------------------------------------------
if __name__ == "__main__":
    key = jax.random.PRNGKey(0)
    k1, k2, k3, k4, k5, k6, kp = jax.random.split(key, 7)

    D, H = 4, 32                     # Gaussian input dim, hidden width
    params = init_params(kp, D, H)

    def check(x1, x2, divergence):
        o1, o2 = combined_net_forward(x1, x2, params, divergence=divergence)
        jax.block_until_ready((o1, o2))
        r1, r2 = _reference_forward(x1, x2, params, divergence)
        B = x1.shape[0]
        assert o1.shape == (B, 1) and o2.shape == (B, 1)
        assert jnp.allclose(o1, r1, atol=1e-5, rtol=1e-5)
        assert jnp.allclose(o2, r2, atol=1e-5, rtol=1e-5)

    # Case 1: lane-aligned batch, Softplus head ('KL') -> single grid step.
    B = 256
    x1 = jax.random.normal(k1, (B, D), jnp.float32)
    x2 = jax.random.normal(k2, (B, D), jnp.float32)
    check(x1, x2, 'KL')

    # Case 2: ragged batch (exercises zero-padding path), Sigmoid head ('GAN').
    B2 = 200
    x1b = jax.random.normal(k3, (B2, D), jnp.float32)
    x2b = jax.random.normal(k4, (B2, D), jnp.float32)
    check(x1b, x2b, 'GAN')

    # Case 3: larger batch -> multi-step grid (even step count on v7x), 'HD'.
    B3 = 2100
    x1c = jax.random.normal(k5, (B3, D), jnp.float32)
    x2c = jax.random.normal(k6, (B3, D), jnp.float32)
    check(x1c, x2c, 'HD')

    print("KERNEL_OK")
</pallas_src>

<mosaic_0001>
module attributes {stable_mosaic.version = 11 : i64} {
  func.func @_combined_kernel(%arg0: i32, %arg1: memref<4x512xf32, #tpu.memory_space<vmem>>, %arg2: memref<32x4xf32, #tpu.memory_space<vmem>>, %arg3: memref<32x1xf32, #tpu.memory_space<vmem>>, %arg4: memref<32x32xf32, #tpu.memory_space<vmem>>, %arg5: memref<32x1xf32, #tpu.memory_space<vmem>>, %arg6: memref<32x1xf32, #tpu.memory_space<vmem>>, %arg7: memref<1xf32, #tpu.memory_space<smem>>, %arg8: memref<1x512xf32, #tpu.memory_space<vmem>>) attributes {dimension_semantics = [#tpu.dimension_semantics<parallel>], iteration_bounds = array<i64: 1>, scalar_prefetch = 0 : i64, scratch_operands = 0 : i64, tpu.core_type = #tpu.core_type<tc>, window_params = [{transform_indices = @transform_0, window_bounds = array<i64: 4, 512>}, {pipeline_mode = #tpu.pipeline_mode<synchronous>, transform_indices = @transform_1, window_bounds = array<i64: 32, 4>}, {pipeline_mode = #tpu.pipeline_mode<synchronous>, transform_indices = @transform_2, window_bounds = array<i64: 32, 1>}, {pipeline_mode = #tpu.pipeline_mode<synchronous>, transform_indices = @transform_3, window_bounds = array<i64: 32, 32>}, {pipeline_mode = #tpu.pipeline_mode<synchronous>, transform_indices = @transform_4, window_bounds = array<i64: 32, 1>}, {pipeline_mode = #tpu.pipeline_mode<synchronous>, transform_indices = @transform_5, window_bounds = array<i64: 32, 1>}, {transform_indices = @transform_6, window_bounds = array<i64: 1>}, {transform_indices = @transform_7, window_bounds = array<i64: 1, 512>}]} {
    %c0 = arith.constant 0 : index
    %c0_0 = arith.constant 0 : index
    %0 = vector.load %arg1[%c0, %c0_0] : memref<4x512xf32, #tpu.memory_space<vmem>>, vector<4x512xf32>
    %c0_1 = arith.constant 0 : index
    %c0_2 = arith.constant 0 : index
    %1 = vector.load %arg2[%c0_1, %c0_2] : memref<32x4xf32, #tpu.memory_space<vmem>>, vector<32x4xf32>
    %cst = arith.constant dense<0.000000e+00> : vector<32x512xf32>
    %2 = tpu.matmul %1, %0, %cst {dimension_numbers = #tpu.dot_dimension_numbers<[1], [0], [0], [1], [0, 0, 1, 1], [], []>, precision = #tpu.contract_precision<fp32>} : vector<32x4xf32>, vector<4x512xf32>, vector<32x512xf32> -> vector<32x512xf32>
    %c0_3 = arith.constant 0 : index
    %c0_4 = arith.constant 0 : index
    %3 = vector.load %arg3[%c0_3, %c0_4] : memref<32x1xf32, #tpu.memory_space<vmem>>, vector<32x1xf32>
    %4 = vector.broadcast %3 : vector<32x1xf32> to vector<32x512xf32>
    %5 = arith.addf %2, %4 : vector<32x512xf32>
    %cst_5 = arith.constant 0.000000e+00 : f32
    %6 = vector.broadcast %cst_5 : f32 to vector<32x512xf32>
    %7 = arith.maximumf %5, %6 : vector<32x512xf32>
    %c0_6 = arith.constant 0 : index
    %c0_7 = arith.constant 0 : index
    %8 = vector.load %arg4[%c0_6, %c0_7] : memref<32x32xf32, #tpu.memory_space<vmem>>, vector<32x32xf32>
    %cst_8 = arith.constant dense<0.000000e+00> : vector<32x512xf32>
    %9 = tpu.matmul %8, %7, %cst_8 {dimension_numbers = #tpu.dot_dimension_numbers<[1], [0], [0], [1], [0, 0, 1, 1], [], []>, precision = #tpu.contract_precision<fp32>} : vector<32x32xf32>, vector<32x512xf32>, vector<32x512xf32> -> vector<32x512xf32>
    %c0_9 = arith.constant 0 : index
    %c0_10 = arith.constant 0 : index
    %10 = vector.load %arg5[%c0_9, %c0_10] : memref<32x1xf32, #tpu.memory_space<vmem>>, vector<32x1xf32>
    %11 = vector.broadcast %10 : vector<32x1xf32> to vector<32x512xf32>
    %12 = arith.addf %9, %11 : vector<32x512xf32>
    %cst_11 = arith.constant 0.000000e+00 : f32
    %13 = vector.broadcast %cst_11 : f32 to vector<32x512xf32>
    %14 = arith.maximumf %12, %13 : vector<32x512xf32>
    %c0_12 = arith.constant 0 : index
    %c0_13 = arith.constant 0 : index
    %15 = vector.load %arg6[%c0_12, %c0_13] : memref<32x1xf32, #tpu.memory_space<vmem>>, vector<32x1xf32>
    %16 = vector.broadcast %15 : vector<32x1xf32> to vector<32x512xf32>
    %17 = arith.mulf %14, %16 : vector<32x512xf32>
    %cst_14 = arith.constant dense<0.000000e+00> : vector<512xf32>
    %18 = vector.multi_reduction <add>, %17, %cst_14 [0] : vector<32x512xf32> to vector<512xf32>
    %19 = vector.shape_cast %18 : vector<512xf32> to vector<1x512xf32>
    %c0_15 = arith.constant 0 : index
    %20 = memref.load %arg7[%c0_15] : memref<1xf32, #tpu.memory_space<smem>>
    %21 = vector.broadcast %20 : f32 to vector<1x512xf32>
    %22 = arith.addf %19, %21 : vector<1x512xf32>
    %cst_16 = arith.constant 2.000000e+01 : f32
    %23 = vector.broadcast %cst_16 : f32 to vector<1x512xf32>
    %24 = arith.cmpf ogt, %22, %23 : vector<1x512xf32>
    %cst_17 = arith.constant 2.000000e+01 : f32
    %25 = vector.broadcast %cst_17 : f32 to vector<1x512xf32>
    %26 = arith.minimumf %22, %25 : vector<1x512xf32>
    %27 = math.exp %26 : vector<1x512xf32>
    %28 = math.log1p %27 : vector<1x512xf32>
    %29 = arith.select %24, %22, %28 : vector<1x512xi1>, vector<1x512xf32>
    %c0_18 = arith.constant 0 : index
    %c0_19 = arith.constant 0 : index
    %30 = vector.load %arg8[%c0_18, %c0_19] : memref<1x512xf32, #tpu.memory_space<vmem>>, vector<1x512xf32>
    tpu.vector_store %arg8[%c0_18, %c0_19], %29 {strides = array<i32>} : memref<1x512xf32, #tpu.memory_space<vmem>>, vector<1x512xf32>,
    return
  }
  func.func @transform_0(%arg0: i32) -> (i32, i32) {
    %c0_i32 = arith.constant 0 : i32
    %c0_i32_0 = arith.constant 0 : i32
    return %c0_i32, %arg0 : i32, i32
  }
  func.func @transform_1(%arg0: i32) -> (i32, i32) {
    %c0_i32 = arith.constant 0 : i32
    %c0_i32_0 = arith.constant 0 : i32
    %c0_i32_1 = arith.constant 0 : i32
    return %c0_i32, %c0_i32_0 : i32, i32
  }
  func.func @transform_2(%arg0: i32) -> (i32, i32) {
    %c0_i32 = arith.constant 0 : i32
    %c0_i32_0 = arith.constant 0 : i32
    %c0_i32_1 = arith.constant 0 : i32
    return %c0_i32, %c0_i32_0 : i32, i32
  }
  func.func @transform_3(%arg0: i32) -> (i32, i32) {
    %c0_i32 = arith.constant 0 : i32
    %c0_i32_0 = arith.constant 0 : i32
    %c0_i32_1 = arith.constant 0 : i32
    return %c0_i32, %c0_i32_0 : i32, i32
  }
  func.func @transform_4(%arg0: i32) -> (i32, i32) {
    %c0_i32 = arith.constant 0 : i32
    %c0_i32_0 = arith.constant 0 : i32
    %c0_i32_1 = arith.constant 0 : i32
    return %c0_i32, %c0_i32_0 : i32, i32
  }
  func.func @transform_5(%arg0: i32) -> (i32, i32) {
    %c0_i32 = arith.constant 0 : i32
    %c0_i32_0 = arith.constant 0 : i32
    %c0_i32_1 = arith.constant 0 : i32
    return %c0_i32, %c0_i32_0 : i32, i32
  }
  func.func @transform_6(%arg0: i32) -> i32 {
    %c0_i32 = arith.constant 0 : i32
    %c0_i32_0 = arith.constant 0 : i32
    return %c0_i32 : i32
  }
  func.func @transform_7(%arg0: i32) -> (i32, i32) {
    %c0_i32 = arith.constant 0 : i32
    %c0_i32_0 = arith.constant 0 : i32
    return %c0_i32, %arg0 : i32, i32
  }
}

</mosaic_0001>

<bundles_post_ra>
// kernel: tpu_custom_call.1
= control target key start
LH: loop header
LB: loop body
LE: loop exit
PB: predicated region body
PF: predicated region fallthrough
CT: control target
= control target key end

     0   :  { %vm67_vm0 = vcmask 31744   ;;  %v2450_v4 = vmov 0   ;;  %s3130_s0 = inlined_call_operand.vmem [shape: f32[4,512], index: 0, kind: input, shape index: {}]   ;;  %s3131_s1 = inlined_call_operand.vmem [shape: f32[32,4], index: 1, kind: input, shape index: {}]   ;;  %s3132_s2 = inlined_call_operand.vmem [shape: f32[32,1], index: 2, kind: input, shape index: {}]   ;;  %s3133_s3 = inlined_call_operand.vmem [shape: f32[32,32], index: 3, kind: input, shape index: {}]   ;;  %s3134_s4 = inlined_call_operand.vmem [shape: f32[32,1], index: 4, kind: input, shape index: {}]   ;;  %s3135_s5 = inlined_call_operand.vmem [shape: f32[32,1], index: 5, kind: input, shape index: {}]   ;;  %s3136_s6 = inlined_call_operand.<no memory space> [shape: f32[1], index: 6, kind: input, shape index: {}]   ;;  %s3137_s7 = inlined_call_operand.hbm [shape: f32[1,512], index: 7, kind: output, shape index: {}]  }
   0x1   :  { %v28_v0 = vld [vmem:[%s3130_s0] sm:$0xff]  ;;  %v31_v2 = vld [vmem:[%s3131_s1 + $0x8] sm:$0xff]  ;;  %2406 = vset.pattern.permute.xlu1 %v2450_v4  ;;  %2405 = vset.pattern.permute.xlu0 %v2450_v4  ;;  %v32_v9 = vld [vmem:[%s3131_s1 + $0x10] sm:$0xff] }
   0x2   :  { %v30_v1 = vld [vmem:[%s3131_s1] sm:$0xff]  ;;  %60 = vst [vmem:[#allocation1] ss:$2 sm:$0xff] %v28_v0  ;;  %v72_v5 = vsel %vm67_vm0, %v31_v2, 0  ;;  %v35_v6 = vld [vmem:[%s3132_s2 + $0x8] sm:$0xff]  ;;  %2407 = vset.pattern.permute.xlu2 %v2450_v4 }
   0x3   :  { %v69_v3 = vsel %vm67_vm0, %v30_v1, 0  ;;  %v2508_v8 = vand.u32 4294901760, %v72_v5  ;;  %45 = vperm.xlu1 %2406, %v35_v6  }
   0x4   :  { %v2506_v7 = vand.u32 4294901760, %v69_v3 }
   0x5   :  { %13 = vsyncpa [#allocation4], 0  ;;  %v2517_v11 = vsub.f32 %v72_v5, %v2508_v8  ;;  %v37_v12 = vld [vmem:[%s3132_s2 + $0x18] sm:$0xff]  ;;  %vm80_vm1 = vcmask 1043456   ;;  %v75_v14 = vsel %vm67_vm0, %v32_v9, 0  ;;  %v34_v15 = vld [vmem:[%s3132_s2] sm:$0xff] }
   0x6   :  { %v2514_v10 = vsub.f32 %v69_v3, %v2506_v7  ;;  %55 = vperm.xlu0 %2405, %v37_v12   ;;  %v2535_v20 = vand.u32 4294901760, %v75_v14  ;;  %v33_v24 = vld [vmem:[%s3131_s1 + $0x18] sm:$0xff]  ;;  %v36_v30 = vld [vmem:[%s3132_s2 + $0x10] sm:$0xff]  ;;  %v2231_v50 = vld [vmem:[%s3135_s5 + $0x8] sm:$0xff]  ;;  %vm1089_vm2 = vcmask 261120   ;;  %vm2375_vm6 = vcmask 1040384  }
   0x7   :  { %v2533_v19 = vand.u32 4294901760, %v2517_v11  ;;  %v78_v32 = vsel %vm67_vm0, %v33_v24, 0  ;;  %v1067_v48 = vld [vmem:[%s3134_s4 + $0x10] sm:$0xff]  ;;  %v1068_v49 = vld [vmem:[%s3134_s4 + $0x18] sm:$0xff]  ;;  %v29_v52 = vld [vmem:[%s3130_s0 + $0x8] sm:$0xff]  ;;  %vm2377_vm12 = vcmask 1042434  }
   0x8   :  { %v2523_v13 = vand.u32 4294901760, %v2514_v10  ;;  %v2548_v29 = vsub.f32 %v75_v14, %v2535_v20  ;;  %v2560_v38 = vand.u32 4294901760, %v78_v32  ;;  %v2232_v51 = vld [vmem:[%s3135_s5 + $0x10] sm:$0xff]  ;;  %62 = vst [vmem:[#allocation1 + $0x10] ss:$2 sm:$0xff] %v29_v52  ;;  %s2394_s19 = sshll.u32 %s3137_s7, 4  ;;  %s2395_s19 = int_to_ptr.hbm [resolvable:$true] %s2394_s19 }
   0x9   :  { %v63_v16 = vld.sshfl [vmem:[#allocation1] sm:$0xff pattern:$0x75316420]  ;;  %v64_v21 = vld.sshfl [vmem:[#allocation1 + $0x8] sm:$0xff pattern:$0x75316420]  ;;  %v117_v28 = vsub.f32 %v2517_v11, %v2533_v19 }
   0xa   :  { %v109_v17 = vsub.f32 %v2514_v10, %v2523_v13  ;;  %v81_v18 = vsel %vm80_vm1, %v63_v16, 0  ;;  %v83_v25 = vsel %vm80_vm1, %v64_v21, 0  ;;  %v2558_v37 = vand.u32 4294901760, %v2548_v29 }
   0xb   :  { %v104_v22 = vand.u32 4294901760, %v81_v18  ;;  %40 = vperm.xlu1 %2406, %v34_v15   ;;  %v343_v27 = vand.u32 4294901760, %v83_v25  ;;  %v2555_v36 = vand.u32 4294901760, %v117_v28  ;;  %v2567_v43 = vsub.f32 %v78_v32, %v2560_v38 }
   0xc   :  { %v2537_v23 = vand.u32 4294901760, %v109_v17  ;;  %v125_v42 = vsub.f32 %v2548_v29, %v2558_v37  ;;  %vm2379_vm13 = vcmask 1041408  }
   0xd   :  { %105 = vmatpush.msra.mxu0 %v104_v22  ;;  %v155_v26 = vsub.f32 %v81_v18, %v104_v22  ;;  %232 = vmatpush.msra.mxu3 %v104_v22  ;;  %v394_v33 = vsub.f32 %v83_v25, %v343_v27  ;;  %v2574_v45 = vand.u32 4294901760, %v2567_v43 }
   0xe   :  { %111 = vmatmul.f32.vlgmr.msra.gmra.mxu0 %v2537_v23  ;;  %236 = vmatmul.f32.vlgmr.msra.gmra.mxu3 %v2523_v13  ;;  %v2571_v44 = vand.u32 4294901760, %v125_v42 }
   0xf   :  { %194 = vmatpush.msra.mxu2 %v155_v26  ;;  %v156_v31 = vand.u32 4294901760, %v155_v26  ;;  %50 = vperm.xlu0 %2405, %v36_v30   ;;  %v395_v35 = vand.u32 4294901760, %v394_v33  ;;  %v133_v46 = vsub.f32 %v2567_v43, %v2574_v45  ;;  %v65_v53 = vld.sshfl [vmem:[#allocation1 + $0x10] sm:$0xff pattern:$0x75316420] }
  0x10   :  { %197 = vmatmul.f32.vlgmr.msra.gmra.mxu2 %v2514_v10  ;;  %v85_v54 = vsel %vm80_vm1, %v65_v53, 0  ;;  %v66_v60 = vld.sshfl [vmem:[#allocation1 + $0x18] sm:$0xff pattern:$0x75316420] }
  0x11   :  { %v157_v34 = vsub.f32 %v155_v26, %v156_v31  ;;  %344 = vmatpush.msrb.mxu2 %v343_v27  ;;  %276 = vmatpush.msrb.mxu0 %v156_v31  ;;  %v396_v40 = vsub.f32 %v394_v33, %v395_v35  ;;  %v2582_v47 = vand.u32 4294901760, %v133_v46  ;;  %v582_v55 = vand.u32 4294901760, %v85_v54 }
  0x12   :  { %v87_v61 = vsel %vm80_vm1, %v66_v60, 0 }
  0x13   :  { %433 = vmatpush.msra.mxu0 %v394_v33  ;;  %v158_v39 = vand.u32 4294901760, %v157_v34  ;;  %515 = vmatpush.msra.mxu2 %v395_v35  ;;  %v397_v41 = vand.u32 4294901760, %v396_v40  ;;  %v633_v56 = vsub.f32 %v85_v54, %v582_v55  ;;  %v821_v62 = vand.u32 4294901760, %v87_v61 }
  0x14   :  { %1086 = vperm.xlu1 %2406, %v1068_v49  }
  0x15   :  { %159 = vmatpush.msra.mxu1 %v158_v39  ;;  %398 = vmatpush.msrb.mxu3 %v397_v41  ;;  %v634_v57 = vand.u32 4294901760, %v633_v56  ;;  %v872_v63 = vsub.f32 %v87_v61, %v821_v62 }
  0x16   :  { %119 = vmatmul.f32.gmra.mxu0 %v2555_v36  ;;  %161 = vmatmul.f32.vlgmr.msra.gmra.mxu1 %v2506_v7 }
  0x17   :  { %242 = vmatmul.f32.gmra.mxu3 %v2533_v19  ;;  %310 = vmatpush.msrb.mxu1 %v104_v22  ;;  %v635_v58 = vsub.f32 %v633_v56, %v634_v57  ;;  %v873_v0 = vand.u32 4294901760, %v872_v63 }
  0x18   :  { %202 = vmatmul.f32.gmra.mxu2 %v2517_v11  ;;  %549 = vmatpush.msra.mxu3 %v343_v27 }
  0x19   :  { %471 = vmatpush.msra.mxu1 %v343_v27  ;;  %1081 = vperm.xlu0 %2405, %v1067_v48   ;;  %v636_v59 = vand.u32 4294901760, %v635_v58  ;;  %v874_v1 = vsub.f32 %v872_v63, %v873_v0 }
  0x1b   :  { %v875_v2 = vand.u32 4294901760, %v874_v1  ;;  %v1062_v1 = vld [vmem:[%s3133_s3 + $0x8] sm:$0xff] }
  0x1c   :  { %2246 = vperm.xlu1 %2406, %v2232_v51  }
  0x1e   :  { %127 = vmatmul.f32.gmra.mxu0 %v2571_v44  ;;  %165 = vmatmul.f32.gmra.mxu1 %v2508_v8 }
  0x1f   :  { %248 = vmatmul.f32.gmra.mxu3 %v2558_v37 }
  0x20   :  { %207 = vmatmul.f32.gmra.mxu2 %v2548_v29 }
  0x21   :  { %2241 = vperm.xlu0 %2405, %v2231_v50  }
  0x26   :  { %135 = vmatmul.f32.gmra.mxu0 %v2582_v47  ;;  %169 = vmatmul.f32.gmra.mxu1 %v2535_v20 }
  0x27   :  { %254 = vmatmul.f32.gmra.mxu3 %v2574_v45 }
  0x28   :  { %212 = vmatmul.f32.gmra.mxu2 %v2567_v43 }
  0x2e   :  { %173 = vmatmul.f32.gmra.mxu1 %v2560_v38  ;;  %278 = vmatmul.f32.vlgmr.msrb.gmra.mxu0 %v2506_v7 }
  0x2f   :  { %400 = vmatmul.f32.vlgmr.msrb.gmra.mxu3 %v2506_v7  ;;  %583 = vmatpush.msrb.mxu0 %v582_v55 }
  0x30   :  { %350 = vmatmul.f32.vlgmr.msrb.gmra.mxu2 %v2537_v23  ;;  %710 = vmatpush.msrb.mxu3 %v582_v55 }
  0x31   :  { %672 = vmatpush.msrb.mxu2 %v633_v56 }
  0x36   :  { %282 = vmatmul.f32.gmra.mxu0 %v2508_v8  ;;  %312 = vmatmul.f32.vlgmr.msrb.gmra.mxu1 %v2506_v7 }
  0x37   :  { %404 = vmatmul.f32.gmra.mxu3 %v2508_v8  ;;  %637 = vmatpush.msrb.mxu1 %v636_v59 }
  0x38   :  { %358 = vmatmul.f32.gmra.mxu2 %v2555_v36 }
  0x3e   :  { %286 = vmatmul.f32.gmra.mxu0 %v2535_v20  ;;  %316 = vmatmul.f32.gmra.mxu1 %v2508_v8 }
  0x3f   :  { %408 = vmatmul.f32.gmra.mxu3 %v2535_v20 }
  0x40   :  { %366 = vmatmul.f32.gmra.mxu2 %v2571_v44 }
  0x46   :  { %290 = vmatmul.f32.gmra.mxu0 %v2560_v38  ;;  %320 = vmatmul.f32.gmra.mxu1 %v2535_v20 }
  0x47   :  { %412 = vmatmul.f32.gmra.mxu3 %v2560_v38 }
  0x48   :  { %374 = vmatmul.f32.gmra.mxu2 %v2582_v47 }
  0x4e   :  { %324 = vmatmul.f32.gmra.mxu1 %v2560_v38  ;;  %436 = vmatmul.f32.vlgmr.msra.gmra.mxu0 %v2514_v10 }
  0x4f   :  { %551 = vmatmul.f32.vlgmr.msra.gmra.mxu3 %v2506_v7  ;;  %754 = vmatpush.msra.mxu0 %v634_v57 }
  0x50   :  { %517 = vmatmul.f32.vlgmr.msra.gmra.mxu2 %v2506_v7  ;;  %876 = vmatpush.msra.mxu3 %v875_v2 }
  0x51   :  { %822 = vmatpush.msra.mxu2 %v821_v62 }
  0x56   :  { %441 = vmatmul.f32.gmra.mxu0 %v2517_v11  ;;  %475 = vmatmul.f32.vlgmr.msra.gmra.mxu1 %v2523_v13 }
  0x57   :  { %555 = vmatmul.f32.gmra.mxu3 %v2508_v8  ;;  %788 = vmatpush.msra.mxu1 %v582_v55 }
  0x58   :  { %521 = vmatmul.f32.gmra.mxu2 %v2508_v8 }
  0x5e   :  { %446 = vmatmul.f32.gmra.mxu0 %v2548_v29  ;;  %481 = vmatmul.f32.gmra.mxu1 %v2533_v19 }
  0x5f   :  { %559 = vmatmul.f32.gmra.mxu3 %v2535_v20 }
  0x60   :  { %525 = vmatmul.f32.gmra.mxu2 %v2535_v20 }
  0x66   :  { %451 = vmatmul.f32.gmra.mxu0 %v2567_v43  ;;  %487 = vmatmul.f32.gmra.mxu1 %v2558_v37 }
  0x67   :  { %563 = vmatmul.f32.gmra.mxu3 %v2560_v38 }
  0x68   :  { %529 = vmatmul.f32.gmra.mxu2 %v2560_v38 }
  0x6e   :  { %493 = vmatmul.f32.gmra.mxu1 %v2574_v45  ;;  %589 = vmatmul.f32.vlgmr.msrb.gmra.mxu0 %v2537_v23 }
  0x6f   :  { %714 = vmatmul.f32.vlgmr.msrb.gmra.mxu3 %v2523_v13  ;;  %911 = vmatpush.msrb.mxu0 %v872_v63 }
  0x70   :  { %675 = vmatmul.f32.vlgmr.msrb.gmra.mxu2 %v2514_v10  ;;  %1027 = vmatpush.msrb.mxu3 %v821_v62 }
  0x71   :  { %993 = vmatpush.msrb.mxu2 %v873_v0 }
  0x75   :  { %v2672_v24 = vpop.permute.xlu1 %45 }
  0x76   :  { %597 = vmatmul.f32.gmra.mxu0 %v2555_v36  ;;  %639 = vmatmul.f32.vlgmr.msrb.gmra.mxu1 %v2506_v7 }
  0x77   :  { %720 = vmatmul.f32.gmra.mxu3 %v2533_v19  ;;  %949 = vmatpush.msrb.mxu1 %v821_v62 }
  0x78   :  { %680 = vmatmul.f32.gmra.mxu2 %v2517_v11 }
  0x7d   :  { %v2681_v31 = vpop.permute.xlu1 %40 }
  0x7e   :  { %605 = vmatmul.f32.gmra.mxu0 %v2571_v44  ;;  %643 = vmatmul.f32.gmra.mxu1 %v2508_v8 }
  0x7f   :  { %726 = vmatmul.f32.gmra.mxu3 %v2558_v37 }
  0x80   :  { %685 = vmatmul.f32.gmra.mxu2 %v2548_v29 }
  0x86   :  { %613 = vmatmul.f32.gmra.mxu0 %v2582_v47  ;;  %647 = vmatmul.f32.gmra.mxu1 %v2535_v20 }
  0x87   :  { %732 = vmatmul.f32.gmra.mxu3 %v2574_v45 }
  0x88   :  { %690 = vmatmul.f32.gmra.mxu2 %v2567_v43 }
  0x8b   :  { %v112_v3 = vpop.f32.mrf.mxu0 }
  0x8e   :  { %651 = vmatmul.f32.gmra.mxu1 %v2560_v38  ;;  %756 = vmatmul.f32.vlgmr.msra.gmra.mxu0 %v2506_v7 }
  0x8f   :  { %878 = vmatmul.f32.vlgmr.msra.gmra.mxu3 %v2506_v7 }
  0x90   :  { %828 = vmatmul.f32.vlgmr.msra.gmra.mxu2 %v2537_v23  ;;  %v2669_v23 = vpop.permute.xlu0 %55 }
  0x91   :  { %v2657_v4 = vpop.f32.mrf.mxu3 }
  0x93   :  { %v120_v5 = vpop.f32.mrf.mxu0  ;;  %v162_v6 = vpop.f32.mrf.mxu1 }
  0x94   :  { %v198_v9 = vpop.f32.mrf.mxu2  ;;  %v121_v35 = vadd.f32 %v120_v5, %v2672_v24 }
  0x96   :  { %760 = vmatmul.f32.gmra.mxu0 %v2508_v8  ;;  %790 = vmatmul.f32.vlgmr.msra.gmra.mxu1 %v2506_v7 }
  0x97   :  { %882 = vmatmul.f32.gmra.mxu3 %v2508_v8 }
  0x98   :  { %836 = vmatmul.f32.gmra.mxu2 %v2555_v36  ;;  %v2679_v30 = vpop.permute.xlu0 %50 }
  0x9a   :  { %v243_v12 = vpop.f32.mrf.mxu3 }
  0x9b   :  { %v128_v14 = vpop.f32.mrf.mxu0  ;;  %v166_v15 = vpop.f32.mrf.mxu1 }
  0x9c   :  { %v203_v16 = vpop.f32.mrf.mxu2  ;;  %v129_v36 = vadd.f32 %v128_v14, %v2679_v30 }
  0x9e   :  { %764 = vmatmul.f32.gmra.mxu0 %v2535_v20  ;;  %794 = vmatmul.f32.gmra.mxu1 %v2508_v8 }
  0x9f   :  { %886 = vmatmul.f32.gmra.mxu3 %v2535_v20 }
  0xa0   :  { %844 = vmatmul.f32.gmra.mxu2 %v2571_v44 }
  0xa2   :  { %v249_v17 = vpop.f32.mrf.mxu3 }
  0xa3   :  { %v136_v18 = vpop.f32.mrf.mxu0  ;;  %v170_v21 = vpop.f32.mrf.mxu1 }
  0xa4   :  { %v208_v22 = vpop.f32.mrf.mxu2  ;;  %v171_v40 = vadd.f32 %v170_v21, %v129_v36  ;;  %v137_v48 = vadd.f32 %v136_v18, %v2669_v23 }
  0xa6   :  { %768 = vmatmul.f32.gmra.mxu0 %v2560_v38  ;;  %798 = vmatmul.f32.gmra.mxu1 %v2535_v20  ;;  %v209_v49 = vadd.f32 %v208_v22, %v171_v40 }
  0xa7   :  { %890 = vmatmul.f32.gmra.mxu3 %v2560_v38 }
  0xa8   :  { %852 = vmatmul.f32.gmra.mxu2 %v2582_v47  ;;  %v250_v51 = vadd.f32 %v249_v17, %v209_v49 }
  0xaa   :  { %v255_v25 = vpop.f32.mrf.mxu3 }
  0xab   :  { %v174_v26 = vpop.f32.mrf.mxu1  ;;  %v279_v27 = vpop.f32.mrf.mxu0 }
  0xac   :  { %v213_v28 = vpop.f32.mrf.mxu2  ;;  %v175_v52 = vadd.f32 %v174_v26, %v137_v48  ;;  %v1063_v26 = vld [vmem:[%s3133_s3 + $0x10] sm:$0xff] }
  0xae   :  { %802 = vmatmul.f32.gmra.mxu1 %v2560_v38  ;;  %914 = vmatmul.f32.vlgmr.msrb.gmra.mxu0 %v2514_v10  ;;  %v113_v10 = vadd.f32 %v112_v3, %v2681_v31  ;;  %v214_v58 = vadd.f32 %v213_v28, %v175_v52  ;;  %v1064_v52 = vld [vmem:[%s3133_s3 + $0x18] sm:$0xff] }
  0xaf   :  { %1029 = vmatmul.f32.vlgmr.msrb.gmra.mxu3 %v2506_v7 }
  0xb0   :  { %995 = vmatmul.f32.vlgmr.msrb.gmra.mxu2 %v2506_v7  ;;  %v167_v7 = vadd.f32 %v166_v15, %v121_v35  ;;  %v163_v41 = vadd.f32 %v162_v6, %v113_v10  ;;  %v256_v2 = vadd.f32 %v255_v25, %v214_v58 }
  0xb2   :  { %v2683_v32 = vpop.f32.mrf.mxu3  ;;  %v204_v47 = vadd.f32 %v203_v16, %v167_v7  ;;  %v1097_v7 = vsel %vm1089_vm2, %v1063_v26, 0 }
  0xb3   :  { %v283_v33 = vpop.f32.mrf.mxu0  ;;  %v313_v34 = vpop.f32.mrf.mxu1 }
  0xb4   :  { %v2687_v39 = vpop.f32.mrf.mxu2 }
  0xb6   :  { %919 = vmatmul.f32.gmra.mxu0 %v2517_v11  ;;  %953 = vmatmul.f32.vlgmr.msrb.gmra.mxu1 %v2523_v13  ;;  %v199_v11 = vadd.f32 %v198_v9, %v163_v41  ;;  %v244_v13 = vadd.f32 %v243_v12, %v204_v47 }
  0xb7   :  { %1033 = vmatmul.f32.gmra.mxu3 %v2508_v8 }
  0xb8   :  { %999 = vmatmul.f32.gmra.mxu2 %v2508_v8  ;;  %v1061_v8 = vld [vmem:[%s3133_s3] sm:$0xff]  ;;  %v238_v53 = vadd.f32 %v2657_v4, %v199_v11  ;;  %v284_v54 = vadd.f32 %v283_v33, %v244_v13  ;;  %v2771_v11 = vand.u32 4294901760, %v1097_v7 }
  0xba   :  { %v2694_v42 = vpop.f32.mrf.mxu3  ;;  %v280_v59 = vadd.f32 %v279_v27, %v238_v53 }
  0xbb   :  { %v287_v44 = vpop.f32.mrf.mxu0  ;;  %v317_v46 = vpop.f32.mrf.mxu1 }
  0xbc   :  { %v2697_v50 = vpop.f32.mrf.mxu2  ;;  %v288_v55 = vadd.f32 %v287_v44, %v250_v51  ;;  %v318_v60 = vadd.f32 %v317_v46, %v284_v54  ;;  %v314_v0 = vadd.f32 %v313_v34, %v280_v59 }
  0xbd   :  { %v360_v53 = vadd.f32 %v2697_v50, %v2672_v24 }
  0xbe   :  { %924 = vmatmul.f32.gmra.mxu0 %v2548_v29  ;;  %959 = vmatmul.f32.gmra.mxu1 %v2533_v19  ;;  %v1091_v19 = vsel %vm1089_vm2, %v1061_v8, 0  ;;  %v1049_v3 = vmax.f32 %v318_v60, 0.0  ;;  %v1045_v5 = vmax.f32 %v314_v0, 0.0  ;;  %v1100_v60 = vsel %vm1089_vm2, %v1064_v52, 0 }
  0xbf   :  { %1037 = vmatmul.f32.gmra.mxu3 %v2535_v20  ;;  %v2712_v63 = vand.u32 4294901760, %v1091_v19 }
  0xc0   :  { %1003 = vmatmul.f32.gmra.mxu2 %v2535_v20  ;;  %v2731_v15 = vand.u32 4294901760, %v1049_v3  ;;  %v2740_v21 = vand.u32 4294901760, %v1045_v5 }
  0xc1   :  { %v2722_v4 = vsub.f32 %v1091_v19, %v2712_v63 }
  0xc2   :  { %v2707_v56 = vpop.f32.mrf.mxu3  ;;  %v1180_v28 = vsub.f32 %v1049_v3, %v2731_v15  ;;  %v1186_v36 = vsub.f32 %v1045_v5, %v2740_v21 }
  0xc3   :  { %v291_v29 = vpop.f32.mrf.mxu0  ;;  %v321_v57 = vpop.f32.mrf.mxu1 }
  0xc4   :  { %v322_v61 = vadd.f32 %v321_v57, %v288_v55  ;;  %v2710_v62 = vpop.f32.mrf.mxu2  ;;  %v292_v6 = vadd.f32 %v291_v29, %v256_v2  ;;  %v1181_v47 = vand.u32 4294901760, %v1180_v28  ;;  %v1187_v51 = vand.u32 4294901760, %v1186_v36 }
  0xc5   :  { %v2786_v29 = vsub.f32 %v1097_v7, %v2771_v11  ;;  %v352_v57 = vadd.f32 %v2687_v39, %v2681_v31 }
  0xc6   :  { %v1053_v20 = vmax.f32 %v322_v61, 0.0  ;;  %929 = vmatmul.f32.gmra.mxu0 %v2567_v43  ;;  %965 = vmatmul.f32.gmra.mxu1 %v2558_v37  ;;  %v1094_v37 = vsel %vm1089_vm2, %v1062_v1, 0  ;;  %v1182_v55 = vsub.f32 %v1180_v28, %v1181_v47  ;;  %v1188_v59 = vsub.f32 %v1186_v36, %v1187_v51 }
  0xc7   :  { %1041 = vmatmul.f32.gmra.mxu3 %v2560_v38  ;;  %v2738_v18 = vand.u32 4294901760, %v1094_v37  ;;  %v368_v1 = vadd.f32 %v2710_v62, %v2679_v30  ;;  %v2799_v5 = vand.u32 4294901760, %v2786_v29 }
  0xc8   :  { %1007 = vmatmul.f32.gmra.mxu2 %v2560_v38  ;;  %v2724_v9 = vand.u32 4294901760, %v1053_v20  ;;  %v2736_v38 = vand.u32 4294901760, %v2722_v4  ;;  %v1183_v39 = vand.u32 4294901760, %v1182_v55 }
  0xc9   :  { %v2753_v34 = vsub.f32 %v1094_v37, %v2738_v18  ;;  %v402_v37 = vadd.f32 %v2683_v32, %v352_v57  ;;  %v410_v62 = vadd.f32 %v2707_v56, %v368_v1 }
  0xca   :  { %v2726_v43 = vpop.f32.mrf.mxu3  ;;  %v1174_v25 = vsub.f32 %v1053_v20, %v2724_v9  ;;  %v1125_v33 = vsub.f32 %v2722_v4, %v2736_v38  ;;  %v406_v20 = vadd.f32 %v2694_v42, %v360_v53  ;;  %v1189_v42 = vand.u32 4294901760, %v1188_v59 }
  0xcb   :  { %v325_v12 = vpop.f32.mrf.mxu1  ;;  %v2729_v14 = vpop.f32.mrf.mxu0  ;;  %v2769_v49 = vand.u32 4294901760, %v2753_v34 }
  0xcc   :  { %v326_v16 = vadd.f32 %v325_v12, %v292_v6  ;;  %v2733_v17 = vpop.f32.mrf.mxu2  ;;  %v1175_v10 = vand.u32 4294901760, %v1174_v25  ;;  %v2766_v48 = vand.u32 4294901760, %v1125_v33  ;;  %v2801_v6 = vand.u32 4294901760, %v1100_v60 }
  0xcd   :  { %v1133_v19 = vsub.f32 %v2753_v34, %v2769_v49 }
  0xce   :  { %v1057_v22 = vmax.f32 %v326_v16, 0.0  ;;  %971 = vmatmul.f32.gmra.mxu1 %v2574_v45  ;;  %v1176_v13 = vsub.f32 %v1174_v25, %v1175_v10  ;;  %v438_v16 = vadd.f32 %v2729_v14, %v402_v37  ;;  %v2811_v32 = vsub.f32 %v1100_v60, %v2801_v6  ;;  %v1066_v60 = vld [vmem:[%s3134_s4 + $0x8] sm:$0xff] }
  0xcf   :  { %v2796_v3 = vand.u32 4294901760, %v1133_v19 }
  0xd0   :  { %v2747_v27 = vand.u32 4294901760, %v1057_v22  ;;  %v1177_v50 = vand.u32 4294901760, %v1176_v13 }
  0xd2   :  { %v1168_v35 = vsub.f32 %v1057_v22, %v2747_v27  ;;  %1115 = vmatpush.msra.mxu0 %v2747_v27  ;;  %1266 = vmatpush.msra.mxu3 %v2747_v27  ;;  %v2758_v45 = vpop.f32.mrf.mxu3 }
  0xd3   :  { %v442_v40 = vpop.f32.mrf.mxu0  ;;  %v476_v41 = vpop.f32.mrf.mxu1 }
  0xd4   :  { %v2762_v44 = vpop.f32.mrf.mxu2  ;;  %1117 = vmatpush.msra.mxu0 %v2724_v9  ;;  %1222 = vmatpush.msra.mxu2 %v1168_v35  ;;  %v1169_v46 = vand.u32 4294901760, %v1168_v35  ;;  %v443_v12 = vadd.f32 %v442_v40, %v406_v20  ;;  %v477_v26 = vadd.f32 %v476_v41, %v438_v16  ;;  %v2822_v41 = vand.u32 4294901760, %v2811_v32 }
  0xd5   :  { %1268 = vmatpush.msra.mxu3 %v2724_v9 }
  0xd6   :  { %1119 = vmatpush.msra.mxu0 %v2731_v15  ;;  %1225 = vmatpush.msra.mxu2 %v1174_v25  ;;  %v1170_v8 = vsub.f32 %v1168_v35, %v1169_v46  ;;  %v1141_v25 = vsub.f32 %v2786_v29, %v2799_v5  ;;  %v376_v35 = vadd.f32 %v2733_v17, %v2669_v23 }
  0xd7   :  { %1270 = vmatpush.msra.mxu3 %v2731_v15 }
  0xd8   :  { %1121 = vmatpush.msra.mxu0 %v2740_v21  ;;  %1228 = vmatpush.msra.mxu2 %v1180_v28  ;;  %v1171_v54 = vand.u32 4294901760, %v1170_v8  ;;  %v2819_v40 = vand.u32 4294901760, %v1141_v25 }
  0xd9   :  { %1272 = vmatpush.msra.mxu3 %v2740_v21  ;;  %1127 = vmatmul.f32.vlgmr.msra.gmra.mxu0 %v2766_v48 }
  0xda   :  { %1313 = vmatpush.msrb.mxu0 %v1169_v46  ;;  %1172 = vmatpush.msra.mxu1 %v1171_v54  ;;  %v556_v58 = vpop.f32.mrf.mxu3 }
  0xdb   :  { %1231 = vmatpush.msra.mxu2 %v1186_v36  ;;  %v447_v61 = vpop.f32.mrf.mxu0  ;;  %v482_v0 = vpop.f32.mrf.mxu1  ;;  %1276 = vmatmul.f32.vlgmr.msra.gmra.mxu3 %v2736_v38 }
  0xdc   :  { %v522_v2 = vpop.f32.mrf.mxu2  ;;  %1317 = vmatpush.msrb.mxu0 %v1175_v10  ;;  %1178 = vmatpush.msra.mxu1 %v1177_v50  ;;  %v483_v22 = vadd.f32 %v482_v0, %v443_v12  ;;  %v448_v28 = vadd.f32 %v447_v61, %v410_v62 }
  0xdd   :  { %1234 = vmatmul.f32.vlgmr.msra.gmra.mxu2 %v2722_v4 }
  0xde   :  { %1321 = vmatpush.msrb.mxu0 %v1181_v47  ;;  %1184 = vmatpush.msra.mxu1 %v1183_v39  ;;  %v523_v36 = vadd.f32 %v522_v2, %v483_v22  ;;  %v414_v47 = vadd.f32 %v2726_v43, %v376_v35 }
  0xe0   :  { %1325 = vmatpush.msrb.mxu0 %v1187_v51  ;;  %1190 = vmatpush.msra.mxu1 %v1189_v42  ;;  %v557_v17 = vadd.f32 %v556_v58, %v523_v36 }
  0xe1   :  { %1135 = vmatmul.f32.gmra.mxu0 %v2796_v3  ;;  %1192 = vmatmul.f32.vlgmr.msra.gmra.mxu1 %v2712_v63 }
  0xe2   :  { %1356 = vmatpush.msrb.mxu1 %v2747_v27  ;;  %v560_v56 = vpop.f32.mrf.mxu3  ;;  %v519_v27 = vadd.f32 %v2762_v44, %v477_v26  ;;  %v1065_v44 = vld [vmem:[%s3134_s4] sm:$0xff] }
  0xe3   :  { %v452_v33 = vpop.f32.mrf.mxu0  ;;  %v488_v14 = vpop.f32.mrf.mxu1  ;;  %1282 = vmatmul.f32.gmra.mxu3 %v2769_v49  ;;  %1071 = vperm.xlu2 %2407, %v1065_v44  }
  0xe4   :  { %v489_v10 = vadd.f32 %v488_v14, %v448_v28  ;;  %v526_v7 = vpop.f32.mrf.mxu2  ;;  %1358 = vmatpush.msrb.mxu1 %v2724_v9  ;;  %v1149_v9 = vsub.f32 %v2811_v32, %v2822_v41  ;;  %v553_v13 = vadd.f32 %v2758_v45, %v519_v27 }
  0xe5   :  { %1239 = vmatmul.f32.gmra.mxu2 %v2753_v34 }
  0xe6   :  { %v527_v46 = vadd.f32 %v526_v7, %v489_v10  ;;  %1360 = vmatpush.msrb.mxu1 %v2731_v15  ;;  %v453_v15 = vadd.f32 %v452_v33, %v414_v47  ;;  %v2840_v19 = vand.u32 4294901760, %v1149_v9  ;;  %v1046_v57 = vmax.f32 %v553_v13, 0.0 }
  0xe8   :  { %v561_v8 = vadd.f32 %v560_v56, %v527_v46  ;;  %1362 = vmatpush.msrb.mxu1 %v2740_v21  ;;  %v1050_v21 = vmax.f32 %v557_v17, 0.0  ;;  %v2851_v61 = vand.u32 4294901760, %v1046_v57 }
  0xe9   :  { %1143 = vmatmul.f32.gmra.mxu0 %v2819_v40  ;;  %1196 = vmatmul.f32.gmra.mxu1 %v2738_v18 }
  0xea   :  { %v1054_v51 = vmax.f32 %v561_v8, 0.0  ;;  %v564_v43 = vpop.f32.mrf.mxu3  ;;  %v2844_v58 = vand.u32 4294901760, %v1050_v21  ;;  %v1464_v16 = vsub.f32 %v1046_v57, %v2851_v61 }
  0xeb   :  { %v494_v52 = vpop.f32.mrf.mxu1  ;;  %v2836_v53 = vpop.f32.mrf.mxu0  ;;  %1288 = vmatmul.f32.gmra.mxu3 %v2799_v5  ;;  %1076 = vperm.xlu2 %2407, %v1066_v60  }
  0xec   :  { %v495_v54 = vadd.f32 %v494_v52, %v453_v15  ;;  %v530_v55 = vpop.f32.mrf.mxu2  ;;  %v2842_v50 = vand.u32 4294901760, %v1054_v51  ;;  %v1458_v42 = vsub.f32 %v1050_v21, %v2844_v58  ;;  %v1465_v14 = vand.u32 4294901760, %v1464_v16 }
  0xed   :  { %1244 = vmatmul.f32.gmra.mxu2 %v2786_v29 }
  0xee   :  { %v531_v45 = vadd.f32 %v530_v55, %v495_v54  ;;  %v1452_v1 = vsub.f32 %v1054_v51, %v2842_v50  ;;  %v1459_v26 = vand.u32 4294901760, %v1458_v42  ;;  %v1466_v47 = vsub.f32 %v1464_v16, %v1465_v14  ;;  %v2230_v51 = vld [vmem:[%s3135_s5] sm:$0xff] }
  0xf0   :  { %v565_v59 = vadd.f32 %v564_v43, %v531_v45  ;;  %v1453_v22 = vand.u32 4294901760, %v1452_v1  ;;  %v1460_v27 = vsub.f32 %v1458_v42, %v1459_v26  ;;  %v1467_v8 = vand.u32 4294901760, %v1466_v47 }
  0xf1   :  { %1151 = vmatmul.f32.gmra.mxu0 %v2840_v19  ;;  %1200 = vmatmul.f32.gmra.mxu1 %v2771_v11 }
  0xf2   :  { %v1058_v0 = vmax.f32 %v565_v59, 0.0  ;;  %v2853_v20 = vpop.f32.mrf.mxu3  ;;  %v1454_v33 = vsub.f32 %v1452_v1, %v1453_v22  ;;  %v1461_v17 = vand.u32 4294901760, %v1460_v27 }
  0xf3   :  { %v2856_v2 = vpop.f32.mrf.mxu0  ;;  %v2858_v39 = vpop.f32.mrf.mxu1  ;;  %1294 = vmatmul.f32.gmra.mxu3 %v2822_v41  ;;  %2236 = vperm.xlu2 %2407, %v2230_v51  }
  0xf4   :  { %v1392_v37 = vand.u32 4294901760, %v1058_v0  ;;  %v2861_v12 = vpop.f32.mrf.mxu2  ;;  %v1455_v46 = vand.u32 4294901760, %v1454_v33  ;;  %v599_v59 = vadd.f32 %v2856_v2, %v2672_v24 }
  0xf5   :  { %1249 = vmatmul.f32.gmra.mxu2 %v2811_v32 }
  0xf6   :  { %v1446_v62 = vsub.f32 %v1058_v0, %v1392_v37  ;;  %1393 = vmatpush.msrb.mxu2 %v1392_v37  ;;  %1544 = vmatpush.msra.mxu1 %v1392_v37 }
  0xf8   :  { %1395 = vmatpush.msrb.mxu2 %v2842_v50  ;;  %1500 = vmatpush.msra.mxu0 %v1446_v62  ;;  %v1447_v25 = vand.u32 4294901760, %v1446_v62 }
  0xf9   :  { %1546 = vmatpush.msra.mxu1 %v2842_v50  ;;  %1327 = vmatmul.f32.vlgmr.msrb.gmra.mxu0 %v2712_v63 }
  0xfa   :  { %1204 = vmatmul.f32.gmra.mxu1 %v2801_v6  ;;  %1397 = vmatpush.msrb.mxu2 %v2844_v58  ;;  %v2871_v28 = vpop.f32.mrf.mxu3  ;;  %v1448_v56 = vsub.f32 %v1446_v62, %v1447_v25 }
  0xfb   :  { %1503 = vmatpush.msra.mxu0 %v1452_v1  ;;  %1548 = vmatpush.msra.mxu1 %v2844_v58  ;;  %v606_v35 = vpop.f32.mrf.mxu0  ;;  %v644_v36 = vpop.f32.mrf.mxu1 }
  0xfc   :  { %v2874_v10 = vpop.f32.mrf.mxu2  ;;  %1399 = vmatpush.msrb.mxu2 %v2851_v61  ;;  %v1449_v7 = vand.u32 4294901760, %v1448_v56  ;;  %v645_v0 = vadd.f32 %v644_v36, %v599_v59 }
  0xfd   :  { %1506 = vmatpush.msra.mxu0 %v1458_v42  ;;  %1550 = vmatpush.msra.mxu1 %v2851_v61 }
  0xfe   :  { %1405 = vmatmul.f32.vlgmr.msrb.gmra.mxu2 %v2766_v48  ;;  %1450 = vmatpush.msrb.mxu3 %v1449_v7  ;;  %v682_v2 = vadd.f32 %v2874_v10, %v645_v0 }
  0xff   :  { %1591 = vmatpush.msra.mxu2 %v1447_v25  ;;  %1509 = vmatpush.msra.mxu0 %v1464_v16 }
 0x100   :  { %1456 = vmatpush.msrb.mxu3 %v1455_v46  ;;  %v722_v33 = vadd.f32 %v2871_v28, %v682_v2 }
 0x101   :  { %1595 = vmatpush.msra.mxu2 %v1453_v22  ;;  %1331 = vmatmul.f32.gmra.mxu0 %v2738_v18 }
 0x102   :  { %1364 = vmatmul.f32.vlgmr.msrb.gmra.mxu1 %v2712_v63  ;;  %1462 = vmatpush.msrb.mxu3 %v1461_v17  ;;  %v727_v9 = vpop.f32.mrf.mxu3 }
 0x103   :  { %1599 = vmatpush.msra.mxu2 %v1459_v26  ;;  %v614_v44 = vpop.f32.mrf.mxu0  ;;  %v648_v13 = vpop.f32.mrf.mxu1 }
 0x104   :  { %v686_v15 = vpop.f32.mrf.mxu2  ;;  %1468 = vmatpush.msrb.mxu3 %v1467_v8 }
 0x105   :  { %1603 = vmatpush.msra.mxu2 %v1465_v14  ;;  %1470 = vmatmul.f32.vlgmr.msrb.gmra.mxu3 %v2712_v63 }
 0x106   :  { %1413 = vmatmul.f32.gmra.mxu2 %v2796_v3  ;;  %1634 = vmatpush.msra.mxu3 %v1392_v37 }
 0x108   :  { %1636 = vmatpush.msra.mxu3 %v2842_v50 }
 0x109   :  { %1335 = vmatmul.f32.gmra.mxu0 %v2771_v11 }
 0x10a   :  { %1368 = vmatmul.f32.gmra.mxu1 %v2738_v18  ;;  %1638 = vmatpush.msra.mxu3 %v2844_v58  ;;  %v733_v43 = vpop.f32.mrf.mxu3  ;;  %v607_v58 = vadd.f32 %v606_v35, %v2679_v30  ;;  %v2233_v35 = vld [vmem:[%s3135_s5 + $0x18] sm:$0xff] }
 0x10b   :  { %v652_v52 = vpop.f32.mrf.mxu1  ;;  %v757_v21 = vpop.f32.mrf.mxu0  ;;  %2251 = vperm.xlu2 %2407, %v2233_v35  }
 0x10c   :  { %v691_v54 = vpop.f32.mrf.mxu2  ;;  %1640 = vmatpush.msra.mxu3 %v2851_v61  ;;  %v649_v60 = vadd.f32 %v648_v13, %v607_v58  ;;  %v591_v61 = vadd.f32 %v2836_v53, %v2681_v31  ;;  %v615_v53 = vadd.f32 %v614_v44, %v2669_v23 }
 0x10d   :  { %1474 = vmatmul.f32.gmra.mxu3 %v2738_v18 }
 0x10e   :  { %1421 = vmatmul.f32.gmra.mxu2 %v2819_v40  ;;  %v641_v37 = vadd.f32 %v2858_v39, %v591_v61  ;;  %v687_v16 = vadd.f32 %v686_v15, %v649_v60  ;;  %v653_v56 = vadd.f32 %v652_v52, %v615_v53 }
 0x110   :  { %v677_v25 = vadd.f32 %v2861_v12, %v641_v37  ;;  %v728_v26 = vadd.f32 %v727_v9, %v687_v16  ;;  %v692_v27 = vadd.f32 %v691_v54, %v653_v56 }
 0x111   :  { %1339 = vmatmul.f32.gmra.mxu0 %v2801_v6 }
 0x112   :  { %1372 = vmatmul.f32.gmra.mxu1 %v2771_v11  ;;  %v2895_v55 = vpop.f32.mrf.mxu3  ;;  %v716_v36 = vadd.f32 %v2853_v20, %v677_v25  ;;  %v734_v44 = vadd.f32 %v733_v43, %v692_v27 }
 0x113   :  { %v761_v57 = vpop.f32.mrf.mxu0  ;;  %v791_v50 = vpop.f32.mrf.mxu1 }
 0x114   :  { %v2897_v45 = vpop.f32.mrf.mxu2  ;;  %v762_v10 = vadd.f32 %v761_v57, %v722_v33  ;;  %v758_v47 = vadd.f32 %v757_v21, %v716_v36 }
 0x115   :  { %1478 = vmatmul.f32.gmra.mxu3 %v2771_v11  ;;  %v830_v27 = vadd.f32 %v2897_v45, %v2681_v31 }
 0x116   :  { %1429 = vmatmul.f32.gmra.mxu2 %v2840_v19  ;;  %v792_v8 = vadd.f32 %v791_v50, %v758_v47 }
 0x117   :  { %v880_v31 = vadd.f32 %v2895_v55, %v830_v27 }
 0x118   :  { %v1047_v51 = vmax.f32 %v792_v8, 0.0 }
 0x119   :  { %1512 = vmatmul.f32.vlgmr.msra.gmra.mxu0 %v2722_v4 }
 0x11a   :  { %1376 = vmatmul.f32.gmra.mxu1 %v2801_v6  ;;  %v2908_v1 = vpop.f32.mrf.mxu3  ;;  %v2945_v59 = vand.u32 4294901760, %v1047_v51 }
 0x11b   :  { %v765_v42 = vpop.f32.mrf.mxu0  ;;  %v795_v62 = vpop.f32.mrf.mxu1 }
 0x11c   :  { %v2911_v22 = vpop.f32.mrf.mxu2  ;;  %v766_v39 = vadd.f32 %v765_v42, %v728_v26  ;;  %v796_v17 = vadd.f32 %v795_v62, %v762_v10  ;;  %v1742_v2 = vsub.f32 %v1047_v51, %v2945_v59 }
 0x11d   :  { %1482 = vmatmul.f32.gmra.mxu3 %v2801_v6  ;;  %v838_v10 = vadd.f32 %v2911_v22, %v2672_v24 }
 0x11e   :  { %1605 = vmatmul.f32.vlgmr.msra.gmra.mxu2 %v2712_v63  ;;  %v1051_v13 = vmax.f32 %v796_v17, 0.0  ;;  %v1743_v35 = vand.u32 4294901760, %v1742_v2 }
 0x11f   :  { %v884_v8 = vadd.f32 %v2908_v1, %v838_v10 }
 0x120   :  { %v2941_v50 = vand.u32 4294901760, %v1051_v13  ;;  %v1744_v17 = vsub.f32 %v1742_v2, %v1743_v35 }
 0x121   :  { %1517 = vmatmul.f32.gmra.mxu0 %v2753_v34 }
 0x122   :  { %1554 = vmatmul.f32.vlgmr.msra.gmra.mxu1 %v2736_v38  ;;  %v2921_v14 = vpop.f32.mrf.mxu3  ;;  %v1736_v0 = vsub.f32 %v1051_v13, %v2941_v50  ;;  %v1745_v13 = vand.u32 4294901760, %v1744_v17 }
 0x123   :  { %v769_v7 = vpop.f32.mrf.mxu0  ;;  %v799_v12 = vpop.f32.mrf.mxu1 }
 0x124   :  { %v800_v46 = vadd.f32 %v799_v12, %v766_v39  ;;  %v2927_v28 = vpop.f32.mrf.mxu2  ;;  %v770_v20 = vadd.f32 %v769_v7, %v734_v44  ;;  %v1737_v56 = vand.u32 4294901760, %v1736_v0 }
 0x125   :  { %1642 = vmatmul.f32.vlgmr.msra.gmra.mxu3 %v2712_v63  ;;  %v846_v24 = vadd.f32 %v2927_v28, %v2679_v30 }
 0x126   :  { %1609 = vmatmul.f32.gmra.mxu2 %v2738_v18  ;;  %v1055_v9 = vmax.f32 %v800_v46, 0.0  ;;  %v1738_v7 = vsub.f32 %v1736_v0, %v1737_v56 }
 0x127   :  { %v888_v30 = vadd.f32 %v2921_v14, %v846_v24 }
 0x128   :  { %v2935_v52 = vand.u32 4294901760, %v1055_v9  ;;  %v1739_v44 = vand.u32 4294901760, %v1738_v7 }
 0x129   :  { %1522 = vmatmul.f32.gmra.mxu0 %v2786_v29 }
 0x12a   :  { %1560 = vmatmul.f32.gmra.mxu1 %v2769_v49  ;;  %v2933_v15 = vpop.f32.mrf.mxu3  ;;  %v1730_v60 = vsub.f32 %v1055_v9, %v2935_v52 }
 0x12b   :  { %v803_v21 = vpop.f32.mrf.mxu1  ;;  %v2937_v54 = vpop.f32.mrf.mxu0 }
 0x12c   :  { %v804_v57 = vadd.f32 %v803_v21, %v770_v20  ;;  %v2939_v58 = vpop.f32.mrf.mxu2  ;;  %v1731_v53 = vand.u32 4294901760, %v1730_v60  ;;  %v916_v28 = vadd.f32 %v2937_v54, %v880_v31 }
 0x12d   :  { %1646 = vmatmul.f32.gmra.mxu3 %v2738_v18 }
 0x12e   :  { %v1059_v43 = vmax.f32 %v804_v57, 0.0  ;;  %1613 = vmatmul.f32.gmra.mxu2 %v2771_v11  ;;  %v1732_v39 = vsub.f32 %v1730_v60, %v1731_v53  ;;  %v854_v57 = vadd.f32 %v2939_v58, %v2669_v23 }
 0x130   :  { %v2948_v61 = vand.u32 4294901760, %v1059_v43  ;;  %v1733_v47 = vand.u32 4294901760, %v1732_v39 }
 0x131   :  { %1527 = vmatmul.f32.gmra.mxu0 %v2811_v32 }
 0x132   :  { %v1724_v37 = vsub.f32 %v1059_v43, %v2948_v61  ;;  %1566 = vmatmul.f32.gmra.mxu1 %v2799_v5  ;;  %1671 = vmatpush.msrb.mxu0 %v2948_v61  ;;  %v2955_v42 = vpop.f32.mrf.mxu3 }
 0x133   :  { %1822 = vmatpush.msrb.mxu3 %v2948_v61  ;;  %v920_v62 = vpop.f32.mrf.mxu0  ;;  %v954_v16 = vpop.f32.mrf.mxu1 }
 0x134   :  { %1673 = vmatpush.msrb.mxu0 %v2935_v52  ;;  %1778 = vmatpush.msrb.mxu2 %v1724_v37  ;;  %v996_v25 = vpop.f32.mrf.mxu2  ;;  %v1725_v26 = vand.u32 4294901760, %v1724_v37  ;;  %v921_v45 = vadd.f32 %v920_v62, %v884_v8  ;;  %v955_v51 = vadd.f32 %v954_v16, %v916_v28 }
 0x135   :  { %1824 = vmatpush.msrb.mxu3 %v2935_v52 }
 0x136   :  { %1617 = vmatmul.f32.gmra.mxu2 %v2801_v6  ;;  %1650 = vmatmul.f32.gmra.mxu3 %v2771_v11  ;;  %v1726_v33 = vsub.f32 %v1724_v37, %v1725_v26 }
 0x137   :  { %1675 = vmatpush.msrb.mxu0 %v2941_v50  ;;  %1781 = vmatpush.msrb.mxu2 %v1730_v60 }
 0x138   :  { %1826 = vmatpush.msrb.mxu3 %v2941_v50  ;;  %v1727_v36 = vand.u32 4294901760, %v1726_v33 }
 0x139   :  { %1677 = vmatpush.msrb.mxu0 %v2945_v59  ;;  %1784 = vmatpush.msrb.mxu2 %v1736_v0  ;;  %v997_v0 = vadd.f32 %v996_v25, %v955_v51 }
 0x13a   :  { %1828 = vmatpush.msrb.mxu3 %v2945_v59  ;;  %1572 = vmatmul.f32.gmra.mxu1 %v2822_v41  ;;  %v1034_v12 = vpop.f32.mrf.mxu3 }
 0x13b   :  { %1683 = vmatmul.f32.vlgmr.msrb.gmra.mxu0 %v2766_v48  ;;  %1728 = vmatpush.msrb.mxu1 %v1727_v36  ;;  %v960_v46 = vpop.f32.mrf.mxu1  ;;  %v925_v9 = vpop.f32.mrf.mxu0 }
 0x13c   :  { %1869 = vmatpush.msra.mxu0 %v1725_v26  ;;  %1787 = vmatpush.msrb.mxu2 %v1742_v2  ;;  %v1000_v22 = vpop.f32.mrf.mxu2  ;;  %v961_v20 = vadd.f32 %v960_v46, %v921_v45  ;;  %v926_v1 = vadd.f32 %v925_v9, %v888_v30 }
 0x13d   :  { %1734 = vmatpush.msrb.mxu1 %v1733_v47  ;;  %v3008_v46 = vpop.permute.xlu2 %1071 }
 0x13e   :  { %1873 = vmatpush.msra.mxu0 %v1731_v53  ;;  %1654 = vmatmul.f32.gmra.mxu3 %v2801_v6  ;;  %v1001_v60 = vadd.f32 %v1000_v22, %v961_v20 }
 0x13f   :  { %1790 = vmatmul.f32.vlgmr.msrb.gmra.mxu2 %v2722_v4  ;;  %1740 = vmatpush.msrb.mxu1 %v1739_v44 }
 0x140   :  { %1877 = vmatpush.msra.mxu0 %v1737_v56  ;;  %v1035_v16 = vadd.f32 %v1034_v12, %v1001_v60 }
 0x141   :  { %1746 = vmatpush.msrb.mxu1 %v1745_v13 }
 0x142   :  { %1881 = vmatpush.msra.mxu0 %v1743_v35  ;;  %1748 = vmatmul.f32.vlgmr.msrb.gmra.mxu1 %v2712_v63  ;;  %v1038_v21 = vpop.f32.mrf.mxu3  ;;  %v1052_v26 = vmax.f32 %v1035_v16, 0.0 }
 0x143   :  { %1691 = vmatmul.f32.gmra.mxu0 %v2796_v3  ;;  %1912 = vmatpush.msra.mxu1 %v2948_v61  ;;  %v966_v55 = vpop.f32.mrf.mxu1  ;;  %v930_v37 = vpop.f32.mrf.mxu0  ;;  %v892_v61 = vadd.f32 %v2933_v15, %v854_v57 }
 0x144   :  { %v967_v14 = vadd.f32 %v966_v55, %v926_v1  ;;  %v1004_v43 = vpop.f32.mrf.mxu2  ;;  %v2999_v39 = vand.u32 4294901760, %v1052_v26 }
 0x145   :  { %1914 = vmatpush.msra.mxu1 %v2935_v52  ;;  %v931_v23 = vadd.f32 %v930_v37, %v892_v61  ;;  %v1031_v52 = vadd.f32 %v2955_v42, %v997_v0  ;;  %v3023_v57 = vpop.permute.xlu2 %1076 }
 0x146   :  { %v1005_v54 = vadd.f32 %v1004_v43, %v967_v14  ;;  %1832 = vmatmul.f32.vlgmr.msrb.gmra.mxu3 %v2736_v38  ;;  %v2014_v7 = vsub.f32 %v1052_v26, %v2999_v39 }
 0x147   :  { %1795 = vmatmul.f32.gmra.mxu2 %v2753_v34  ;;  %1916 = vmatpush.msra.mxu1 %v2941_v50  ;;  %v1048_v15 = vmax.f32 %v1031_v52, 0.0 }
 0x148   :  { %v1039_v62 = vadd.f32 %v1038_v21, %v1005_v54  ;;  %v2015_v22 = vand.u32 4294901760, %v2014_v7 }
 0x149   :  { %1918 = vmatpush.msra.mxu1 %v2945_v59  ;;  %v3002_v35 = vand.u32 4294901760, %v1048_v15 }
 0x14a   :  { %1752 = vmatmul.f32.gmra.mxu1 %v2738_v18  ;;  %v1056_v58 = vmax.f32 %v1039_v62, 0.0  ;;  %v1042_v56 = vpop.f32.mrf.mxu3  ;;  %v2016_v13 = vsub.f32 %v2014_v7, %v2015_v22 }
 0x14b   :  { %1699 = vmatmul.f32.gmra.mxu0 %v2819_v40  ;;  %v972_v2 = vpop.f32.mrf.mxu1  ;;  %v2020_v47 = vsub.f32 %v1048_v15, %v3002_v35 }
 0x14c   :  { %v973_v53 = vadd.f32 %v972_v2, %v931_v23  ;;  %v1008_v25 = vpop.f32.mrf.mxu2  ;;  %v2996_v33 = vand.u32 4294901760, %v1056_v58  ;;  %v2017_v14 = vand.u32 4294901760, %v2016_v13 }
 0x14d   :  { %v2021_v44 = vand.u32 4294901760, %v2020_v47 }
 0x14e   :  { %v1009_v50 = vadd.f32 %v1008_v25, %v973_v53  ;;  %1838 = vmatmul.f32.gmra.mxu3 %v2769_v49  ;;  %v2008_v36 = vsub.f32 %v1056_v58, %v2996_v33  ;;  %v3034_v58 = vpop.permute.xlu0 %1081 }
 0x14f   :  { %1800 = vmatmul.f32.gmra.mxu2 %v2786_v29  ;;  %v2022_v51 = vsub.f32 %v2020_v47, %v2021_v44 }
 0x150   :  { %v1043_v59 = vadd.f32 %v1042_v56, %v1009_v50  ;;  %v2009_v17 = vand.u32 4294901760, %v2008_v36 }
 0x152   :  { %v1060_v42 = vmax.f32 %v1043_v59, 0.0  ;;  %1756 = vmatmul.f32.gmra.mxu1 %v2771_v11  ;;  %v2010_v9 = vsub.f32 %v2008_v36, %v2009_v17 }
 0x153   :  { %1707 = vmatmul.f32.gmra.mxu0 %v2840_v19 }
 0x154   :  { %v1948_v10 = vand.u32 4294901760, %v1060_v42  ;;  %v2011_v20 = vand.u32 4294901760, %v2010_v9 }
 0x156   :  { %v2002_v12 = vsub.f32 %v1060_v42, %v1948_v10  ;;  %1844 = vmatmul.f32.gmra.mxu3 %v2799_v5  ;;  %v1128_v27 = vpop.f32.mrf.mxu0  ;;  %1949 = vmatpush.msra.mxu2 %v1948_v10 }
 0x157   :  { %1805 = vmatmul.f32.gmra.mxu2 %v2811_v32  ;;  %2100 = vmatpush.msrb.mxu1 %v1948_v10  ;;  %v1129_v31 = vadd.f32 %v1128_v27, %v3008_v46 }
 0x158   :  { %1951 = vmatpush.msra.mxu2 %v2996_v33  ;;  %2056 = vmatpush.msrb.mxu0 %v2002_v12  ;;  %v2003_v24 = vand.u32 4294901760, %v2002_v12 }
 0x159   :  { %2102 = vmatpush.msrb.mxu1 %v2996_v33 }
 0x15a   :  { %1760 = vmatmul.f32.gmra.mxu1 %v2801_v6  ;;  %1953 = vmatpush.msra.mxu2 %v2999_v39  ;;  %v2004_v8 = vsub.f32 %v2002_v12, %v2003_v24 }
 0x15b   :  { %1883 = vmatmul.f32.vlgmr.msra.gmra.mxu0 %v2712_v63  ;;  %2104 = vmatpush.msrb.mxu1 %v2999_v39 }
 0x15c   :  { %2059 = vmatpush.msrb.mxu0 %v2008_v36  ;;  %1955 = vmatpush.msra.mxu2 %v3002_v35  ;;  %v2005_v45 = vand.u32 4294901760, %v2004_v8 }
 0x15d   :  { %2106 = vmatpush.msrb.mxu1 %v3002_v35 }
 0x15e   :  { %2147 = vmatpush.msrb.mxu2 %v2003_v24  ;;  %2062 = vmatpush.msrb.mxu0 %v2014_v7  ;;  %v1136_v30 = vpop.f32.mrf.mxu0  ;;  %v1193_v28 = vpop.f32.mrf.mxu1 }
 0x15f   :  { %1850 = vmatmul.f32.gmra.mxu3 %v2822_v41  ;;  %1961 = vmatmul.f32.vlgmr.msra.gmra.mxu2 %v2766_v48  ;;  %v1277_v1 = vpop.f32.mrf.mxu3  ;;  %v1194_v55 = vadd.f32 %v1193_v28, %v1129_v31  ;;  %v2023_v48 = vand.u32 4294901760, %v2022_v51  ;;  %v1137_v54 = vadd.f32 %v1136_v30, %v3023_v57  ;;  %v3056_v28 = vpop.permute.xlu2 %2236 }
 0x160   :  { %2006 = vmatpush.msra.mxu3 %v2005_v45  ;;  %2065 = vmatpush.msrb.mxu0 %v2020_v47  ;;  %v1235_v21 = vpop.f32.mrf.mxu2 }
 0x161   :  { %2151 = vmatpush.msrb.mxu2 %v2009_v17  ;;  %v1236_v43 = vadd.f32 %v1235_v21, %v1194_v55 }
 0x162   :  { %2012 = vmatpush.msra.mxu3 %v2011_v20  ;;  %1920 = vmatmul.f32.vlgmr.msra.gmra.mxu1 %v2712_v63 }
 0x163   :  { %2155 = vmatpush.msrb.mxu2 %v2015_v22  ;;  %1887 = vmatmul.f32.gmra.mxu0 %v2738_v18  ;;  %v1278_v60 = vadd.f32 %v1277_v1, %v1236_v43 }
 0x164   :  { %2018 = vmatpush.msra.mxu3 %v2017_v14 }
 0x165   :  { %2159 = vmatpush.msrb.mxu2 %v2021_v44 }
 0x166   :  { %2024 = vmatpush.msra.mxu3 %v2023_v48  ;;  %v1144_v0 = vpop.f32.mrf.mxu0  ;;  %v1197_v37 = vpop.f32.mrf.mxu1 }
 0x167   :  { %2026 = vmatmul.f32.vlgmr.msra.gmra.mxu3 %v2712_v63  ;;  %1969 = vmatmul.f32.gmra.mxu2 %v2796_v3  ;;  %v1283_v61 = vpop.f32.mrf.mxu3  ;;  %v1198_v62 = vadd.f32 %v1197_v37, %v1137_v54  ;;  %v1145_v2 = vadd.f32 %v1144_v0, %v3034_v58 }
 0x168   :  { %2190 = vmatpush.msrb.mxu3 %v1948_v10  ;;  %v1240_v16 = vpop.f32.mrf.mxu2 }
 0x169   :  { %v1241_v23 = vadd.f32 %v1240_v16, %v1198_v62 }
 0x16a   :  { %2192 = vmatpush.msrb.mxu3 %v2996_v33  ;;  %1924 = vmatmul.f32.gmra.mxu1 %v2738_v18  ;;  %v3042_v33 = vpop.permute.xlu1 %1086 }
 0x16b   :  { %1891 = vmatmul.f32.gmra.mxu0 %v2771_v11  ;;  %v1284_v52 = vadd.f32 %v1283_v61, %v1241_v23 }
 0x16c   :  { %2194 = vmatpush.msrb.mxu3 %v2999_v39 }
 0x16e   :  { %2196 = vmatpush.msrb.mxu3 %v3002_v35  ;;  %v1152_v3 = vpop.f32.mrf.mxu0  ;;  %v1201_v53 = vpop.f32.mrf.mxu1 }
 0x16f   :  { %2030 = vmatmul.f32.gmra.mxu3 %v2738_v18  ;;  %1977 = vmatmul.f32.gmra.mxu2 %v2819_v40  ;;  %v1202_v25 = vadd.f32 %v1201_v53, %v1145_v2  ;;  %v1289_v26 = vpop.f32.mrf.mxu3  ;;  %v1153_v59 = vadd.f32 %v1152_v3, %v3042_v33  ;;  %v3075_v3 = vpop.permute.xlu2 %2251 }
 0x170   :  { %v1245_v56 = vpop.f32.mrf.mxu2 }
 0x171   :  { %v1246_v50 = vadd.f32 %v1245_v56, %v1202_v25 }
 0x172   :  { %1928 = vmatmul.f32.gmra.mxu1 %v2771_v11 }
 0x173   :  { %1895 = vmatmul.f32.gmra.mxu0 %v2801_v6  ;;  %v1290_v15 = vadd.f32 %v1289_v26, %v1246_v50 }
 0x176   :  { %v1328_v39 = vpop.f32.mrf.mxu0 }
 0x177   :  { %2034 = vmatmul.f32.gmra.mxu3 %v2771_v11  ;;  %1985 = vmatmul.f32.gmra.mxu2 %v2840_v19  ;;  %v1205_v42 = vpop.f32.mrf.mxu1  ;;  %v1329_v40 = vadd.f32 %v1328_v39, %v1278_v60  ;;  %v1295_v10 = vpop.f32.mrf.mxu3 }
 0x178   :  { %v1206_v35 = vadd.f32 %v1205_v42, %v1153_v59  ;;  %v1250_v36 = vpop.f32.mrf.mxu2 }
 0x17a   :  { %v1251_v7 = vadd.f32 %v1250_v36, %v1206_v35  ;;  %1932 = vmatmul.f32.gmra.mxu1 %v2801_v6 }
 0x17b   :  { %2068 = vmatmul.f32.vlgmr.msrb.gmra.mxu0 %v2722_v4 }
 0x17c   :  { %v1296_v12 = vadd.f32 %v1295_v10, %v1251_v7 }
 0x17e   :  { %v1332_v27 = vpop.f32.mrf.mxu0 }
 0x17f   :  { %2038 = vmatmul.f32.gmra.mxu3 %v2801_v6  ;;  %2161 = vmatmul.f32.vlgmr.msrb.gmra.mxu2 %v2712_v63  ;;  %v1333_v47 = vadd.f32 %v1332_v27, %v1284_v52  ;;  %v1365_v17 = vpop.f32.mrf.mxu1 }
 0x180   :  { %v1366_v24 = vadd.f32 %v1365_v17, %v1329_v40 }
 0x181   :  { %v1406_v19 = vpop.f32.mrf.mxu2 }
 0x182   :  { %2110 = vmatmul.f32.vlgmr.msrb.gmra.mxu1 %v2736_v38  ;;  %v1407_v22 = vadd.f32 %v1406_v19, %v3008_v46  ;;  %v2214_v44 = vmax.f32 %v1366_v24, 0.0  ;;  %v3059_v38 = vpop.permute.xlu0 %2241 }
 0x183   :  { %2073 = vmatmul.f32.gmra.mxu0 %v2753_v34 }
 0x184   :  { %v2254_v34 = vmul.f32 %v3056_v28, %v2214_v44 }
 0x186   :  { %v1336_v8 = vpop.f32.mrf.mxu0 }
 0x187   :  { %2198 = vmatmul.f32.vlgmr.msrb.gmra.mxu3 %v2712_v63  ;;  %2165 = vmatmul.f32.gmra.mxu2 %v2738_v18  ;;  %v1337_v4 = vadd.f32 %v1336_v8, %v1290_v15  ;;  %v1369_v9 = vpop.f32.mrf.mxu1 }
 0x188   :  { %v1370_v31 = vadd.f32 %v1369_v9, %v1333_v47  ;;  %v1471_v45 = vpop.f32.mrf.mxu3 }
 0x189   :  { %v1414_v13 = vpop.f32.mrf.mxu2  ;;  %v1472_v30 = vadd.f32 %v1471_v45, %v1407_v22 }
 0x18a   :  { %v2218_v20 = vmax.f32 %v1370_v31, 0.0  ;;  %2116 = vmatmul.f32.gmra.mxu1 %v2769_v49  ;;  %v1415_v1 = vadd.f32 %v1414_v13, %v3023_v57 }
 0x18b   :  { %2078 = vmatmul.f32.gmra.mxu0 %v2786_v29  ;;  %v3068_v29 = vpop.permute.xlu1 %2246 }
 0x18c   :  { %v2258_v63 = vmul.f32 %v3059_v38, %v2218_v20 }
 0x18e   :  { %v1340_v51 = vpop.f32.mrf.mxu0  ;;  %v2270_v55 = vadd.f32 %v2258_v63, %v2254_v34 }
 0x18f   :  { %2202 = vmatmul.f32.gmra.mxu3 %v2738_v18  ;;  %2169 = vmatmul.f32.gmra.mxu2 %v2771_v11  ;;  %v1341_v21 = vadd.f32 %v1340_v51, %v1296_v12  ;;  %v1373_v14 = vpop.f32.mrf.mxu1 }
 0x190   :  { %v1374_v43 = vadd.f32 %v1373_v14, %v1337_v4  ;;  %v1475_v49 = vpop.f32.mrf.mxu3 }
 0x191   :  { %v1422_v48 = vpop.f32.mrf.mxu2  ;;  %v1476_v60 = vadd.f32 %v1475_v49, %v1415_v1 }
 0x192   :  { %v2222_v54 = vmax.f32 %v1374_v43, 0.0  ;;  %2122 = vmatmul.f32.gmra.mxu1 %v2799_v5  ;;  %v1423_v61 = vadd.f32 %v1422_v48, %v3034_v58 }
 0x193   :  { %2083 = vmatmul.f32.gmra.mxu0 %v2811_v32 }
 0x194   :  { %v2262_v0 = vmul.f32 %v3068_v29, %v2222_v54 }
 0x196   :  { %v2271_v18 = vadd.f32 %v2270_v55, %v2262_v0  ;;  %v1513_v37 = vpop.f32.mrf.mxu0 }
 0x197   :  { %2206 = vmatmul.f32.gmra.mxu3 %v2771_v11  ;;  %2173 = vmatmul.f32.gmra.mxu2 %v2801_v6  ;;  %v1377_v62 = vpop.f32.mrf.mxu1  ;;  %v1514_v16 = vadd.f32 %v1513_v37, %v1472_v30 }
 0x198   :  { %v1378_v23 = vadd.f32 %v1377_v62, %v1341_v21  ;;  %v1479_v52 = vpop.f32.mrf.mxu3 }
 0x199   :  { %v1430_v2 = vpop.f32.mrf.mxu2  ;;  %v1480_v5 = vadd.f32 %v1479_v52, %v1423_v61 }
 0x19a   :  { %v2226_v53 = vmax.f32 %v1378_v23, 0.0  ;;  %2128 = vmatmul.f32.gmra.mxu1 %v2822_v41  ;;  %v1431_v26 = vadd.f32 %v1430_v2, %v3042_v33 }
 0x19c   :  { %v2266_v32 = vmul.f32 %v3075_v3, %v2226_v53 }
 0x19e   :  { %v2272_v25 = vadd.f32 %v2271_v18, %v2266_v32  ;;  %v1518_v11 = vpop.f32.mrf.mxu0 }
 0x19f   :  { %2210 = vmatmul.f32.gmra.mxu3 %v2801_v6  ;;  %v1519_v56 = vadd.f32 %v1518_v11, %v1476_v60  ;;  %v1555_v50 = vpop.f32.mrf.mxu1  ;;  %v3089_v11 = vstv %s3136_s6  ;;  %s2451_s6 = smov [#allocation3]  }
 0x1a0   :  { %v1556_v15 = vadd.f32 %v1555_v50, %v1514_v16  ;;  %v1483_v59 = vpop.f32.mrf.mxu3  ;;  %v2273_v6 = vrot.slane %v2272_v25, 4  ;;  %s2392_s18 = sshll.u32 %s2451_s6, 4  ;;  %s2393_s18 = int_to_ptr.vmem [resolvable:$true] %s2392_s18 }
 0x1a1   :  { %v1484_v39 = vadd.f32 %v1483_v59, %v1431_v26  ;;  %v1606_v42 = vpop.f32.mrf.mxu2 }
 0x1a2   :  { %v1607_v40 = vadd.f32 %v1606_v42, %v1556_v15  ;;  %v2274_v45 = vadd.f32 %v2273_v6, %v2272_v25 }
 0x1a4   :  { %v2275_v63 = vrot.slane %v2274_v45, 2 }
 0x1a6   :  { %v1523_v35 = vpop.f32.mrf.mxu0  ;;  %v2276_v48 = vadd.f32 %v2275_v63, %v2274_v45 }
 0x1a7   :  { %v1524_v36 = vadd.f32 %v1523_v35, %v1480_v5  ;;  %v1561_v10 = vpop.f32.mrf.mxu1 }
 0x1a8   :  { %v1562_v7 = vadd.f32 %v1561_v10, %v1519_v56  ;;  %v1643_v41 = vpop.f32.mrf.mxu3  ;;  %v2277_v18 = vrot.slane %v2276_v48, 1 }
 0x1a9   :  { %v1610_v12 = vpop.f32.mrf.mxu2  ;;  %v1644_v27 = vadd.f32 %v1643_v41, %v1607_v40 }
 0x1aa   :  { %v1611_v47 = vadd.f32 %v1610_v12, %v1562_v7  ;;  %v2278_v5 = vadd.f32 %v2277_v18, %v2276_v48 }
 0x1ab   :  { %v2215_v4 = vmax.f32 %v1644_v27, 0.0 }
 0x1ac   :  { %v3093_v50 = vadd.f32 %v3089_v11, %v2278_v5 }
 0x1ad   :  { %v2255_v30 = vmul.f32 %v3056_v28, %v2215_v4 }
 0x1ae   :  { %v1528_v17 = vpop.f32.mrf.mxu0  ;;  %v2316_v7 = vmin.f32 %v3093_v50, 20.0  ;;  %vm2312_vm7 = vcmp.gt.f32.partialorder %v3093_v50, 20.0 }
 0x1af   :  { %v1529_v24 = vadd.f32 %v1528_v17, %v1484_v39  ;;  %v1567_v19 = vpop.f32.mrf.mxu1 }
 0x1b0   :  { %v1568_v22 = vadd.f32 %v1567_v19, %v1524_v36  ;;  %v1647_v8 = vpop.f32.mrf.mxu3  ;;  %v2320_v17 = vmul.f32 1.442695, %v2316_v7 }
 0x1b1   :  { %v1614_v9 = vpop.f32.mrf.mxu2  ;;  %v1648_v44 = vadd.f32 %v1647_v8, %v1611_v47 }
 0x1b2   :  { %v1615_v31 = vadd.f32 %v1614_v9, %v1568_v22  ;;  %2408 = vpow2.f32 %v2320_v17 }
 0x1b3   :  { %v2219_v13 = vmax.f32 %v1648_v44, 0.0 }
 0x1b5   :  { %v2259_v20 = vmul.f32 %v3059_v38, %v2219_v13 }
 0x1b7   :  { %v2279_v34 = vadd.f32 %v2259_v20, %v2255_v30  ;;  %v1573_v1 = vpop.f32.mrf.mxu1 }
 0x1b8   :  { %v1574_v51 = vadd.f32 %v1573_v1, %v1529_v24  ;;  %v1684_v55 = vpop.f32.mrf.mxu0  ;;  %v2409_v63 = vpop.eup %2408 }
 0x1b9   :  { %v1618_v21 = vpop.f32.mrf.mxu2  ;;  %v1651_v14 = vpop.f32.mrf.mxu3  ;;  %v1685_v60 = vadd.f32 %v1684_v55, %v3008_v46 }
 0x1ba   :  { %v1619_v43 = vadd.f32 %v1618_v21, %v1574_v51  ;;  %v1652_v49 = vadd.f32 %v1651_v14, %v1615_v31  ;;  %v2328_v21 = vadd.f32 1.0, %v2409_v63 }
 0x1bc   :  { %v2223_v54 = vmax.f32 %v1652_v49, 0.0 }
 0x1be   :  { %v2263_v0 = vmul.f32 %v3068_v29, %v2223_v54 }
 0x1bf   :  { %v1749_v37 = vpop.f32.mrf.mxu1 }
 0x1c0   :  { %v2280_v61 = vadd.f32 %v2279_v34, %v2263_v0  ;;  %v1692_v62 = vpop.f32.mrf.mxu0  ;;  %v1750_v16 = vadd.f32 %v1749_v37, %v1685_v60  ;;  %v2331_v0 = vmul.f32 -0.5, %v2409_v63 }
 0x1c1   :  { %v1655_v23 = vpop.f32.mrf.mxu3  ;;  %v1693_v32 = vadd.f32 %v1692_v62, %v3023_v57 }
 0x1c2   :  { %v1656_v52 = vadd.f32 %v1655_v23, %v1619_v43  ;;  %v1791_v2 = vpop.f32.mrf.mxu2 }
 0x1c3   :  { %v1792_v53 = vadd.f32 %v1791_v2, %v1750_v16  ;;  %v2334_v2 = vand.u32 2147483647, %v2409_v63 }
 0x1c4   :  { %v2227_v25 = vmax.f32 %v1656_v52, 0.0  ;;  %v2332_v52 = vadd.f32 1.0, %v2331_v0 }
 0x1c5   :  { %vm3100_vm3 = vcmp.lt.f32.partialorder %v2334_v2, 0.0004427343 }
 0x1c6   :  { %v2267_v26 = vmul.f32 %v3075_v3, %v2227_v25 }
 0x1c7   :  { %v1753_v56 = vpop.f32.mrf.mxu1 }
 0x1c8   :  { %v2281_v15 = vadd.f32 %v2280_v61, %v2267_v26  ;;  %v1700_v59 = vpop.f32.mrf.mxu0  ;;  %v1754_v39 = vadd.f32 %v1753_v56, %v1693_v32 }
 0x1c9   :  { %v1833_v42 = vpop.f32.mrf.mxu3  ;;  %v1701_v27 = vadd.f32 %v1700_v59, %v3034_v58 }
 0x1ca   :  { %v2282_v40 = vrot.slane %v2281_v15, 4  ;;  %v1796_v35 = vpop.f32.mrf.mxu2  ;;  %v1834_v36 = vadd.f32 %v1833_v42, %v1792_v53 }
 0x1cb   :  { %v1797_v10 = vadd.f32 %v1796_v35, %v1754_v39 }
 0x1cc   :  { %v2283_v41 = vadd.f32 %v2282_v40, %v2281_v15  ;;  %v2333_v40 = vmul.f32 %v2409_v63, %v2332_v52 }
 0x1ce   :  { %v2284_v12 = vrot.slane %v2283_v41, 2 }
 0x1cf   :  { %v1757_v47 = vpop.f32.mrf.mxu1 }
 0x1d0   :  { %v2285_v6 = vadd.f32 %v2284_v12, %v2283_v41  ;;  %v1708_v24 = vpop.f32.mrf.mxu0  ;;  %v1758_v19 = vadd.f32 %v1757_v47, %v1701_v27 }
 0x1d1   :  { %v1839_v22 = vpop.f32.mrf.mxu3 }
 0x1d2   :  { %v2286_v8 = vrot.slane %v2285_v6, 1  ;;  %v1801_v4 = vpop.f32.mrf.mxu2  ;;  %v1840_v9 = vadd.f32 %v1839_v22, %v1797_v10  ;;  %v1709_v22 = vadd.f32 %v1708_v24, %v3042_v33 }
 0x1d3   :  { %v1802_v44 = vadd.f32 %v1801_v4, %v1758_v19 }
 0x1d4   :  { %v2287_v31 = vadd.f32 %v2286_v8, %v2285_v6 }
 0x1d6   :  { %v2309_v45 = vadd.f32 %v3089_v11, %v2287_v31 }
 0x1d7   :  { %v1761_v13 = vpop.f32.mrf.mxu1 }
 0x1d8   :  { %v2317_v30 = vmin.f32 %v2309_v45, 20.0  ;;  %v1884_v20 = vpop.f32.mrf.mxu0  ;;  %vm2313_vm5 = vcmp.gt.f32.partialorder %v2309_v45, 20.0 }
 0x1d9   :  { %v1845_v34 = vpop.f32.mrf.mxu3  ;;  %v1885_v60 = vadd.f32 %v1884_v20, %v1834_v36 }
 0x1da   :  { %v2322_v1 = vmul.f32 1.442695, %v2317_v30  ;;  %v1806_v51 = vpop.f32.mrf.mxu2  ;;  %v1846_v55 = vadd.f32 %v1845_v34, %v1802_v44  ;;  %v1762_v30 = vadd.f32 %v1761_v13, %v1709_v22 }
 0x1dc   :  { %2410 = vpow2.f32 %v2322_v1 }
 0x1dd   :  { %2412 = vlog2.f32 %v2328_v21 }
 0x1df   :  { %v1921_v14 = vpop.f32.mrf.mxu1 }
 0x1e0   :  { %v1888_v43 = vpop.f32.mrf.mxu0  ;;  %v1922_v37 = vadd.f32 %v1921_v14, %v1885_v60 }
 0x1e1   :  { %v1889_v16 = vadd.f32 %v1888_v43, %v1840_v9 }
 0x1e2   :  { %v1851_v49 = vpop.f32.mrf.mxu3  ;;  %v2411_v48 = vpop.eup %2410  ;;  %v2216_v5 = vmax.f32 %v1922_v37, 0.0 }
 0x1e3   :  { %v3098_v54 = vpop.f32.mrf.mxu2  ;;  %v2337_v18 = vadd.f32 1.0, %v2411_v48  ;;  %v2340_v61 = vmul.f32 -0.5, %v2411_v48  ;;  %v2413_v62 = vpop.eup %2412  ;;  %v2343_v15 = vand.u32 2147483647, %v2411_v48 }
 0x1e4   :  { %v2330_v56 = vmul.f32 0.6931472, %v2413_v62  ;;  %v2256_v36 = vmul.f32 %v3056_v28, %v2216_v5 }
 0x1e5   :  { %2414 = vlog2.f32 %v2337_v18  ;;  %v2341_v25 = vadd.f32 1.0, %v2340_v61  ;;  %vm2344_vm4 = vcmp.lt.f32.partialorder %v2343_v15, 0.0004427343 }
 0x1e6   :  { %v2336_v12 = vsel %vm3100_vm3, %v2333_v40, %v2330_v56 }
 0x1e7   :  { %v1925_v23 = vpop.f32.mrf.mxu1  ;;  %v2342_v41 = vmul.f32 %v2411_v48, %v2341_v25  ;;  %v2364_v31 = vsel %vm2312_vm7, %v3093_v50, %v2336_v12 }
 0x1e8   :  { %v1892_v53 = vpop.f32.mrf.mxu0  ;;  %v1926_v32 = vadd.f32 %v1925_v23, %v1889_v16 }
 0x1e9   :  { %v1893_v27 = vadd.f32 %v1892_v53, %v1846_v55  ;;  %v1807_v55 = vadd.f32 %v1806_v51, %v1762_v30 }
 0x1ea   :  { %v2027_v26 = vpop.f32.mrf.mxu3  ;;  %v2220_v59 = vmax.f32 %v1926_v32, 0.0 }
 0x1eb   :  { %v1970_v39 = vpop.f32.mrf.mxu2  ;;  %v2415_v42 = vpop.eup %2414  ;;  %v1852_v14 = vadd.f32 %v1851_v49, %v1807_v55  ;;  %v1963_v49 = vadd.f32 %v3098_v54, %v3008_v46 }
 0x1ec   :  { %v2260_v10 = vmul.f32 %v3059_v38, %v2220_v59  ;;  %v2339_v7 = vmul.f32 0.6931472, %v2415_v42  ;;  %v1971_v51 = vadd.f32 %v1970_v39, %v3023_v57 }
 0x1ed   :  { %v2028_v15 = vadd.f32 %v2027_v26, %v1963_v49 }
 0x1ee   :  { %v2288_v47 = vadd.f32 %v2260_v10, %v2256_v36  ;;  %v2345_v17 = vsel %vm2344_vm4, %v2342_v41, %v2339_v7 }
 0x1ef   :  { %v1929_v6 = vpop.f32.mrf.mxu1  ;;  %v2365_v19 = vsel %vm2313_vm5, %v2309_v45, %v2345_v17 }
 0x1f0   :  { %v1896_v8 = vpop.f32.mrf.mxu0  ;;  %v1930_v4 = vadd.f32 %v1929_v6, %v1893_v27  ;;  %v2372_v9 = vrot.slane %v2365_v19, 7 }
 0x1f1   :  { %v1897_v48 = vadd.f32 %v1896_v8, %v1852_v14 }
 0x1f2   :  { %v2031_v44 = vpop.f32.mrf.mxu3  ;;  %v2224_v20 = vmax.f32 %v1930_v4, 0.0  ;;  %v3111_v34 = vsel %vm2375_vm6, %v2364_v31, %v2372_v9 }
 0x1f3   :  { %v1978_v63 = vpop.f32.mrf.mxu2  ;;  %v2032_v25 = vadd.f32 %v2031_v44, %v1971_v51 }
 0x1f4   :  { %v2264_v1 = vmul.f32 %v3068_v29, %v2224_v20  ;;  %v1979_v32 = vadd.f32 %v1978_v63, %v3034_v58 }
 0x1f6   :  { %v2289_v45 = vadd.f32 %v2288_v47, %v2264_v1 }
 0x1f7   :  { %v1933_v21 = vpop.f32.mrf.mxu1 }
 0x1f8   :  { %v2069_v24 = vpop.f32.mrf.mxu0  ;;  %v1934_v0 = vadd.f32 %v1933_v21, %v1897_v48 }
 0x1f9   :  { %v2070_v36 = vadd.f32 %v2069_v24, %v2028_v15 }
 0x1fa   :  { %v2035_v43 = vpop.f32.mrf.mxu3  ;;  %v2228_v37 = vmax.f32 %v1934_v0, 0.0 }
 0x1fb   :  { %v1986_v60 = vpop.f32.mrf.mxu2  ;;  %v2036_v42 = vadd.f32 %v2035_v43, %v1979_v32 }
 0x1fc   :  { %v2268_v62 = vmul.f32 %v3075_v3, %v2228_v37  ;;  %v1987_v46 = vadd.f32 %v1986_v60, %v3042_v33 }
 0x1fe   :  { %v2290_v23 = vadd.f32 %v2289_v45, %v2268_v62 }
 0x1ff   :  { %v2111_v18 = vpop.f32.mrf.mxu1 }
 0x200   :  { %v2074_v13 = vpop.f32.mrf.mxu0  ;;  %v2291_v5 = vrot.slane %v2290_v23, 4  ;;  %v2112_v39 = vadd.f32 %v2111_v18, %v2070_v36 }
 0x201   :  { %v2075_v40 = vadd.f32 %v2074_v13, %v2032_v25 }
 0x202   :  { %v2039_v61 = vpop.f32.mrf.mxu3  ;;  %v2292_v59 = vadd.f32 %v2291_v5, %v2290_v23 }
 0x203   :  { %v2162_v50 = vpop.f32.mrf.mxu2  ;;  %v2040_v27 = vadd.f32 %v2039_v61, %v1987_v46 }
 0x204   :  { %v2293_v57 = vrot.slane %v2292_v59, 2  ;;  %v2163_v17 = vadd.f32 %v2162_v50, %v2112_v39  ;;  %v2382_v39 = vlaneseq }
 0x206   :  { %v2294_v58 = vadd.f32 %v2293_v57, %v2292_v59  ;;  %vm2384_vm14 = vcmp.lt.s32.totalorder %v2382_v39, 512 }
 0x207   :  { %v2117_v16 = vpop.f32.mrf.mxu1 }
 0x208   :  { %v2079_v53 = vpop.f32.mrf.mxu0  ;;  %v2118_v7 = vadd.f32 %v2117_v16, %v2075_v40  ;;  %v2295_v44 = vrot.slane %v2294_v58, 1 }
 0x209   :  { %v2080_v10 = vadd.f32 %v2079_v53, %v2036_v42 }
 0x20a   :  { %v2199_v52 = vpop.f32.mrf.mxu3  ;;  %v2296_v55 = vadd.f32 %v2295_v44, %v2294_v58 }
 0x20b   :  { %v2166_v2 = vpop.f32.mrf.mxu2  ;;  %v2200_v8 = vadd.f32 %v2199_v52, %v2163_v17 }
 0x20c   :  { %v2167_v54 = vadd.f32 %v2166_v2, %v2118_v7  ;;  %v2310_v48 = vadd.f32 %v3089_v11, %v2296_v55 }
 0x20d   :  { %v2217_v63 = vmax.f32 %v2200_v8, 0.0 }
 0x20e   :  { %v2318_v61 = vmin.f32 %v2310_v48, 20.0  ;;  %vm2314_vm9 = vcmp.gt.f32.partialorder %v2310_v48, 20.0 }
 0x20f   :  { %v2123_v56 = vpop.f32.mrf.mxu1  ;;  %v2257_v14 = vmul.f32 %v3056_v28, %v2217_v63 }
 0x210   :  { %v2124_v12 = vadd.f32 %v2123_v56, %v2080_v10  ;;  %v2084_v47 = vpop.f32.mrf.mxu0  ;;  %v2324_v62 = vmul.f32 1.442695, %v2318_v61 }
 0x211   :  { %v2085_v4 = vadd.f32 %v2084_v47, %v2040_v27 }
 0x212   :  { %v2203_v35 = vpop.f32.mrf.mxu3  ;;  %2416 = vpow2.f32 %v2324_v62 }
 0x213   :  { %v2170_v41 = vpop.f32.mrf.mxu2  ;;  %v2204_v26 = vadd.f32 %v2203_v35, %v2167_v54 }
 0x214   :  { %v2171_v6 = vadd.f32 %v2170_v41, %v2124_v12 }
 0x215   :  { %v2221_v31 = vmax.f32 %v2204_v26, 0.0 }
 0x217   :  { %v2129_v19 = vpop.f32.mrf.mxu1  ;;  %v2261_v33 = vmul.f32 %v3059_v38, %v2221_v31 }
 0x218   :  { %v2130_v30 = vadd.f32 %v2129_v19, %v2085_v4  ;;  %v2417_v51 = vpop.eup %2416 }
 0x219   :  { %v2297_v60 = vadd.f32 %v2261_v33, %v2257_v14  ;;  %v2346_v49 = vadd.f32 1.0, %v2417_v51  ;;  %v2349_v53 = vmul.f32 -0.5, %v2417_v51  ;;  %v2352_v59 = vand.u32 2147483647, %v2417_v51 }
 0x21a   :  { %v2207_v22 = vpop.f32.mrf.mxu3 }
 0x21b   :  { %v2208_v9 = vadd.f32 %v2207_v22, %v2171_v6  ;;  %v2174_v20 = vpop.f32.mrf.mxu2  ;;  %v2350_v56 = vadd.f32 1.0, %v2349_v53  ;;  %vm2353_vm8 = vcmp.lt.f32.partialorder %v2352_v59, 0.0004427343 }
 0x21c   :  { %v2175_v45 = vadd.f32 %v2174_v20, %v2130_v30 }
 0x21d   :  { %v2225_v1 = vmax.f32 %v2208_v9, 0.0  ;;  %v2351_v40 = vmul.f32 %v2417_v51, %v2350_v56 }
 0x21f   :  { %v2265_v24 = vmul.f32 %v3068_v29, %v2225_v1 }
 0x221   :  { %v2298_v18 = vadd.f32 %v2297_v60, %v2265_v24 }
 0x222   :  { %v2211_v21 = vpop.f32.mrf.mxu3 }
 0x223   :  { %v2212_v43 = vadd.f32 %v2211_v21, %v2175_v45 }
 0x225   :  { %v2229_v0 = vmax.f32 %v2212_v43, 0.0 }
 0x227   :  { %v2269_v37 = vmul.f32 %v3075_v3, %v2229_v0 }
 0x229   :  { %v2299_v50 = vadd.f32 %v2298_v18, %v2269_v37 }
 0x22b   :  { %v2300_v13 = vrot.slane %v2299_v50, 4 }
 0x22d   :  { %v2301_v16 = vadd.f32 %v2300_v13, %v2299_v50 }
 0x22f   :  { %v2302_v38 = vrot.slane %v2301_v16, 2 }
 0x231   :  { %v2303_v23 = vadd.f32 %v2302_v38, %v2301_v16 }
 0x233   :  { %v2304_v52 = vrot.slane %v2303_v23, 1 }
 0x235   :  { %v2305_v28 = vadd.f32 %v2304_v52, %v2303_v23 }
 0x237   :  { %v2311_v29 = vadd.f32 %v3089_v11, %v2305_v28 }
 0x239   :  { %v2319_v2 = vmin.f32 %v2311_v29, 20.0  ;;  %vm2315_vm11 = vcmp.gt.f32.partialorder %v2311_v29, 20.0 }
 0x23b   :  { %v2326_v5 = vmul.f32 1.442695, %v2319_v2 }
 0x23d   :  { %2418 = vpow2.f32 %v2326_v5 }
 0x23e   :  { %2420 = vlog2.f32 %v2346_v49 }
 0x243   :  { %v2419_v3 = vpop.eup %2418 }
 0x244   :  { %v2421_v32 = vpop.eup %2420  ;;  %v2355_v25 = vadd.f32 1.0, %v2419_v3  ;;  %v2358_v15 = vmul.f32 -0.5, %v2419_v3  ;;  %v2361_v36 = vand.u32 2147483647, %v2419_v3 }
 0x245   :  { %v2348_v42 = vmul.f32 0.6931472, %v2421_v32 }
 0x246   :  { %2422 = vlog2.f32 %v2355_v25  ;;  %v2359_v35 = vadd.f32 1.0, %v2358_v15  ;;  %vm2362_vm10 = vcmp.lt.f32.partialorder %v2361_v36, 0.0004427343 }
 0x247   :  { %v2354_v10 = vsel %vm2353_vm8, %v2351_v40, %v2348_v42 }
 0x248   :  { %v2360_v41 = vmul.f32 %v2419_v3, %v2359_v35  ;;  %v2366_v57 = vsel %vm2314_vm9, %v2310_v48, %v2354_v10 }
 0x249   :  { %v2373_v54 = vrot.slane %v2366_v57, 6 }
 0x24c   :  { %v2423_v11 = vpop.eup %2422 }
 0x24d   :  { %v2357_v7 = vmul.f32 0.6931472, %v2423_v11 }
 0x24f   :  { %v2363_v12 = vsel %vm2362_vm10, %v2360_v41, %v2357_v7 }
 0x250   :  { %v2367_v46 = vsel %vm2315_vm11, %v2311_v29, %v2363_v12 }
 0x251   :  { %v2374_v27 = vrot.slane %v2367_v46, 5 }
 0x253   :  { %v2378_v47 = vsel %vm2377_vm12, %v2373_v54, %v2374_v27 }
 0x254   :  { %v2380_v58 = vsel %vm2379_vm13, %v3111_v34, %v2378_v47 }
 0x255   :  { %2386 = vst.msk [vmem:[#allocation3] sm:$0xf] %vm2384_vm14, %v2380_v58 }
 0x256   :  { %2397 = dma.vmem_to_hbm [thread:$0]  %s2393_s18, 64, %s2395_s19, [#allocation4]  }
 0x257   :  { %2448 = dma.done.wait [#allocation4], 64  }
 0x258   :  { %2449 = vsyncadd [#allocation4], 4294967232 }
 0x259   :  { %2402 = vsyncpa [#allocation4], 1 }

</bundles_post_ra>
